<compile_context>
chip_gen: v5e
topology: v5e:2x2
jax: 0.10.0
libtpu: 0.0.40
codegen_flags: <defaults>
</compile_context>

<pallas_src>
import functools

import jax
import jax.numpy as jnp
from jax.experimental import pallas as pl
from jax.experimental.pallas import tpu as pltpu


def _round_up(x, m):
    return (x + m - 1) // m * m


def _cdiv(a, b):
    return (a + b - 1) // b


def _siren_kernel(x_ref, w_ref, b_ref, o_ref, *, cast_bf16):
    # x_ref: (TB, K) streamed activation tile.
    # w_ref: (K, Np) resident pre-transposed weight (w0 already folded in).
    # b_ref: (1, Np)  resident bias (w0 already folded in), f32.
    x = x_ref[...]
    if cast_bf16:
        x = x.astype(jnp.bfloat16)          # VPU cast, hidden under the x DMA
    acc = jnp.dot(x, w_ref[...], preferred_element_type=jnp.float32)
    acc = acc + b_ref[...]                  # (TB, Np) + (1, Np) broadcast, f32
    o_ref[...] = jnp.sin(acc).astype(o_ref.dtype)


def siren_layer(x, weight, bias, w0=1.0, *, block_b=1024, use_bf16_matmul=False,
                out_dtype=None, x_buffers=2):
    """y = sin(w0 * (x @ weight.T + bias)).

    x: (B, dim_in); weight: (dim_out, dim_in) (PyTorch layout); bias: (dim_out,).
    """
    B, dim_in = x.shape
    dim_out = weight.shape[0]
    out_dtype = jnp.dtype(x.dtype) if out_dtype is None else jnp.dtype(out_dtype)

    # Lane-dense output width (multiple of 128) -> unmasked vst stores.
    n_pad = _round_up(dim_out, 128)

    # Fold w0 into the (tiny) weight / bias once and pre-transpose the weight to
    # (dim_in, n_pad).  Padded columns are zero -> sin(0)=0 in sliced-off lanes.
    mm_dtype = jnp.bfloat16 if use_bf16_matmul else jnp.dtype(x.dtype)
    wp = jnp.float32(w0) * weight.astype(jnp.float32)
    if n_pad != dim_out:
        wp = jnp.pad(wp, ((0, n_pad - dim_out), (0, 0)))
    wp = wp.T.astype(mm_dtype)                                   # (dim_in, n_pad)
    bp = (jnp.float32(w0) * bias.astype(jnp.float32)).reshape(1, dim_out)
    if n_pad != dim_out:
        bp = jnp.pad(bp, ((0, 0), (0, n_pad - dim_out)))         # (1, n_pad)

    # Batch tile: multiple of 8 sublanes; keep >= 2 tiles so the "parallel" grid
    # axis can be sharded across v7x's two TensorCores.
    tb = _round_up(max(8, min(block_b, B)), 8)
    if B > 8:
        tb = min(tb, _round_up(_cdiv(B, 2), 8))

    x_bytes = jnp.dtype(x.dtype).itemsize
    mm_bytes = jnp.dtype(mm_dtype).itemsize
    out_bytes = out_dtype.itemsize

    # Generation-aware VMEM budget (~78% of per-core VMEM: headroom for compiler
    # internal scratch / semaphores).  v7x: ~50 of 64 MiB; v5e/v6e: ~100 of 128 MiB.
    try:
        vmem_cap = int(getattr(pltpu.get_tpu_info(), "vmem_capacity_bytes", 64 << 20))
    except Exception:
        vmem_cap = 64 << 20
    vmem_budget = (vmem_cap * 25) // 32

    def _vmem_need(t):
        return (x_buffers * t * dim_in * x_bytes      # streamed x tiles
                + 2 * t * n_pad * out_bytes           # double-buffered out tiles
                + n_pad * dim_in * mm_bytes           # resident W (single buffer)
                + n_pad * 4)                          # resident bias

    # Shrink the batch tile rather than clamping the limit below the need.
    while tb > 8 and _vmem_need(tb) > vmem_budget:
        tb = max(8, _round_up(tb // 2, 8))

    vmem_limit = int(min(vmem_budget, max(16 << 20, _vmem_need(tb) + (2 << 20))))

    grid = (_cdiv(B, tb),)

    cost = pl.CostEstimate(
        flops=2 * B * dim_in * n_pad,
        transcendentals=B * n_pad,
        bytes_accessed=(B * dim_in * x_bytes
                        + dim_in * n_pad * mm_bytes
                        + n_pad * 4
                        + B * n_pad * out_bytes),
    )

    x_spec_kwargs = {}
    if x_buffers != 2:
        x_spec_kwargs["pipeline_mode"] = pl.Buffered(x_buffers)

    kernel = functools.partial(
        _siren_kernel,
        cast_bf16=bool(use_bf16_matmul) and jnp.dtype(x.dtype) != jnp.bfloat16,
    )

    out = pl.pallas_call(
        kernel,
        out_shape=jax.ShapeDtypeStruct((B, n_pad), out_dtype),
        grid_spec=pltpu.PrefetchScalarGridSpec(
            num_scalar_prefetch=0,
            grid=grid,
            in_specs=[
                # x streams per batch tile (double- or triple-buffered).
                pl.BlockSpec((tb, dim_in), lambda i: (i, 0), **x_spec_kwargs),
                # W / bias: constant index_map, resident, single-buffered.
                pl.BlockSpec((dim_in, n_pad), lambda i: (0, 0),
                             pipeline_mode=pl.Buffered(1)),
                pl.BlockSpec((1, n_pad), lambda i: (0, 0),
                             pipeline_mode=pl.Buffered(1)),
            ],
            out_specs=pl.BlockSpec((tb, n_pad), lambda i: (i, 0)),
        ),
        compiler_params=pltpu.CompilerParams(
            dimension_semantics=("parallel",),
            vmem_limit_bytes=vmem_limit,
        ),
        cost_estimate=cost,
    )(x, wp, bp)

    # Only trim the zero-padded lanes when dim_out is not already 128-aligned.
    return out[:, :dim_out] if n_pad != dim_out else out


def siren_layer_ref(x, weight, bias, w0=1.0):
    # Pure-JAX reference of the PyTorch forward: sin(w0 * F.linear(x, W, b))
    return jnp.sin(w0 * (x @ weight.T + bias))


if __name__ == "__main__":
    # Module hyperparameters (deterministic, in-script init — no checkpoint load).
    dim_in, dim_out = 16, 32
    c = 6.0
    batch = 200  # NOT a multiple of the batch tile -> exercises the ragged last block

    key = jax.random.PRNGKey(0)
    k_x, k_w, k_b = jax.random.split(key, 3)

    # init_: uniform(-sqrt(c/dim_in), +sqrt(c/dim_in)) for both weight and bias.
    lim = float(jnp.sqrt(c / dim_in))
    weight = jax.random.uniform(k_w, (dim_out, dim_in), jnp.float32, -lim, lim)
    bias = jax.random.uniform(k_b, (dim_out,), jnp.float32, -lim, lim)
    x = jax.random.uniform(k_x, (batch, dim_in), jnp.float32, -1.0, 1.0)

    # f32 path, default w0=1.0 (matches the PyTorch forward semantics).
    out = siren_layer(x, weight, bias, 1.0)
    jax.block_until_ready(out)
    ref = siren_layer_ref(x, weight, bias, 1.0)
    assert out.shape == (batch, dim_out)
    assert jnp.allclose(out, ref, atol=1e-5, rtol=1e-5), "mismatch vs reference (f32)"

    # f32 path with a non-trivial w0 (w0 folded into W/b -> differs only by rounding).
    w0_first = 30.0
    out30 = siren_layer(x, weight, bias, w0_first, block_b=128)
    jax.block_until_ready(out30)
    ref30 = siren_layer_ref(x, weight, bias, w0_first)
    assert jnp.allclose(out30, ref30, atol=5e-3, rtol=5e-3), "mismatch vs reference (w0=30)"

    # bf16-MXU path (v5e/v6e/v7x perf lever): in-kernel x cast, f32 accumulate + epilogue.
    out_bf16 = siren_layer(x, weight, bias, 1.0, use_bf16_matmul=True, x_buffers=3)
    jax.block_until_ready(out_bf16)
    assert jnp.allclose(out_bf16, ref, atol=1e-1, rtol=1e-1), "mismatch vs reference (bf16)"

    print("KERNEL_OK")
</pallas_src>

<mosaic_0001>
module attributes {stable_mosaic.version = 11 : i64} {
  func.func @_siren_kernel(%arg0: i32, %arg1: memref<104x16xf32, #tpu.memory_space<vmem>>, %arg2: memref<16x128xf32, #tpu.memory_space<vmem>>, %arg3: memref<1x128xf32, #tpu.memory_space<vmem>>, %arg4: memref<104x128xf32, #tpu.memory_space<vmem>>) attributes {dimension_semantics = [#tpu.dimension_semantics<parallel>], iteration_bounds = array<i64: 2>, scalar_prefetch = 0 : i64, scratch_operands = 0 : i64, tpu.core_type = #tpu.core_type<tc>, window_params = [{transform_indices = @transform_0, window_bounds = array<i64: 104, 16>}, {pipeline_mode = #tpu.pipeline_mode<synchronous>, transform_indices = @transform_1, window_bounds = array<i64: 16, 128>}, {pipeline_mode = #tpu.pipeline_mode<synchronous>, transform_indices = @transform_2, window_bounds = array<i64: 1, 128>}, {transform_indices = @transform_3, window_bounds = array<i64: 104, 128>}]} {
    %c0 = arith.constant 0 : index
    %c0_0 = arith.constant 0 : index
    %0 = vector.load %arg1[%c0, %c0_0] : memref<104x16xf32, #tpu.memory_space<vmem>>, vector<104x16xf32>
    %c0_1 = arith.constant 0 : index
    %c0_2 = arith.constant 0 : index
    %1 = vector.load %arg2[%c0_1, %c0_2] : memref<16x128xf32, #tpu.memory_space<vmem>>, vector<16x128xf32>
    %cst = arith.constant dense<0.000000e+00> : vector<104x128xf32>
    %2 = tpu.matmul %0, %1, %cst {dimension_numbers = #tpu.dot_dimension_numbers<[1], [0], [0], [1], [0, 0, 1, 1], [], []>} : vector<104x16xf32>, vector<16x128xf32>, vector<104x128xf32> -> vector<104x128xf32>
    %c0_3 = arith.constant 0 : index
    %c0_4 = arith.constant 0 : index
    %3 = vector.load %arg3[%c0_3, %c0_4] : memref<1x128xf32, #tpu.memory_space<vmem>>, vector<1x128xf32>
    %4 = vector.broadcast %3 : vector<1x128xf32> to vector<104x128xf32>
    %5 = arith.addf %2, %4 : vector<104x128xf32>
    %6 = math.sin %5 : vector<104x128xf32>
    %c0_5 = arith.constant 0 : index
    %c0_6 = arith.constant 0 : index
    %7 = vector.load %arg4[%c0_5, %c0_6] : memref<104x128xf32, #tpu.memory_space<vmem>>, vector<104x128xf32>
    tpu.vector_store %arg4[%c0_5, %c0_6], %6 {strides = array<i32>} : memref<104x128xf32, #tpu.memory_space<vmem>>, vector<104x128xf32>,
    return
  }
  func.func @transform_0(%arg0: i32) -> (i32, i32) {
    %c0_i32 = arith.constant 0 : i32
    %c0_i32_0 = arith.constant 0 : i32
    return %arg0, %c0_i32 : i32, i32
  }
  func.func @transform_1(%arg0: i32) -> (i32, i32) {
    %c0_i32 = arith.constant 0 : i32
    %c0_i32_0 = arith.constant 0 : i32
    %c0_i32_1 = arith.constant 0 : i32
    return %c0_i32, %c0_i32_0 : i32, i32
  }
  func.func @transform_2(%arg0: i32) -> (i32, i32) {
    %c0_i32 = arith.constant 0 : i32
    %c0_i32_0 = arith.constant 0 : i32
    %c0_i32_1 = arith.constant 0 : i32
    return %c0_i32, %c0_i32_0 : i32, i32
  }
  func.func @transform_3(%arg0: i32) -> (i32, i32) {
    %c0_i32 = arith.constant 0 : i32
    %c0_i32_0 = arith.constant 0 : i32
    return %arg0, %c0_i32 : i32, i32
  }
}

</mosaic_0001>

<bundles_post_ra>
// kernel: tpu_custom_call.1
= control target key start
LH: loop header
LB: loop body
LE: loop exit
PB: predicated region body
PF: predicated region fallthrough
CT: control target
= control target key end

     0   :  { %8 = vsyncpa [#allocation3], 0  ;;  %s4220_s0 = inlined_call_operand.vmem [shape: f32[200,16], index: 0, kind: input, shape index: {}]   ;;  %s4221_s1 = inlined_call_operand.vmem [shape: f32[16,128], index: 1, kind: input, shape index: {}]   ;;  %s4222_s2 = inlined_call_operand.vmem [shape: f32[1,128], index: 2, kind: input, shape index: {}]   ;;  %s4223_s3 = inlined_call_operand.hbm [shape: f32[200,128], index: 3, kind: output, shape index: {}]  }
   0x1   :  { %10 = vsyncpa [#allocation3 + $0x1], 0  ;;  %s2651_s12 = smov 0   ;;  %s2653_s13 = smov 0  }
   0x2   :  { %s2655_s14 = smov 0   ;;  %s2657_s15 = smov 0  }
   0x3 LB: > { %s2672_s16 = sadd.s32 4294967295, %s2619_s15   ;;  %s2424_s17 = sadd.s32 4294967294, %s2619_s15   ;;  %s2619_s15 = sphi %s2657_s15, %s4248_s15   ;;  %s2615_s14 = sphi %s2655_s14, %s4247_s14   ;;  %s2611_s13 = sphi %s2653_s13, %s4246_s13   ;;  %s2607_s12 = sphi %s2651_s12, %s4245_s12  }
   0x4   : > { %s2676_s18 = sadd.s32 1, %s2619_s15   ;;  %s91_s19 = sadd.s32 1, %s2615_s14 }
   0x5   : > { %s88_s20 = ssub.s32 %s2619_s15, %s2676_s18  ;;  %p101_p0 = scmp.ne.s32.totalorder %s2615_s14, %s2611_s13 }
   0x6   : > { %p89_p1 = scmp.eq.s32.totalorder %s88_s20, 0  ;;  %p102_p2 = scmp.eq.s32.totalorder %s2672_s16, 1 }
   0x7   : > { %p107_p3 = scmp.ne.s32.totalorder %s2611_s13, %s2607_s12  ;;  %p108_p4 = scmp.eq.s32.totalorder %s2424_s17, 1 }
   0x8   : > { %s2687_s21 = scalar_select %p89_p1, %s2615_s14, %s91_s19  }
   0x9   : > { %p2689_p5 = por %p102_p2, %p101_p0  ;;  %p2693_p6 = por %p108_p4, %p107_p3 }
   0xa   : > { %p2427_p7 = scmp.ge.s32.totalorder %s2619_s15, 1  ;;  %p149_p8 = scmp.lt.s32.totalorder %s2619_s15, 3 }
   0xc   : > { %p150_p9 = pnand %p2427_p7, %p149_p8 }
   0xd   : > { %s2706_s28 = smul.u32 (!%p150_p9), 13, %s2672_s16  ;;  %s174_s7 = sand.u32 (!%p150_p9), 1, %s2611_s13  }
   0xe   : > { %153 = sbr.rel (%p150_p9) target bundleno = 712 (0x2c8), region = 32  ;;  %s4159_s25 = scalar_lea.sflag (!%p150_p9), [#allocation3], %s174_s7 }
   0xf   : > { %p182_p10 = scmp.lt.s32.totalorder (!%p150_p9), %s2706_s28, 24  ;;  %s2495_s10 = smul.u32 (!%p150_p9), 104, %s174_s7 }
  0x11   : > { %s3035_s11 = scalar_lea.vmem (!%p150_p9), [#allocation2], %s2495_s10 }
  0x13   : > { %v210_v0 = vld [vmem:[%s4221_s1 + $0x8] sm:$0xff]  ;;  %v209_v1 = vld [vmem:[%s4221_s1] sm:$0xff]  ;;  %s183_s29 = scalar_select %p182_p10, %s2706_s28, 24  ;;  %vm215_vm0 = vcmask 130048   ;;  %v2621_v43 = vmov 683565275  }
  0x14   : > { %269 = vmatpush.msra.mxu0 %v210_v0  ;;  %2489 = vmatpush.msra.mxu1 %v210_v0  ;;  %v2730_v15 = vld [vmem:[%s4222_s2] ss:$0 sm:$0xff]  ;;  %v2622_v45 = vmov 2475754826   ;;  %v2623_v47 = vmov 2131351028  }
  0x15   : > { %2490 = vmatpush.msra.mxu2 %v210_v0  ;;  %2491 = vmatpush.msra.mxu3 %v210_v0  ;;  %s2428_s30 = sshll.u32 %s183_s29, 3  ;;  %v2624_v49 = vmov 2102212464   ;;  %v2625_v51 = vmov 920167782   ;;  %s2348_s26 = ssub.s32 (%p2689_p5), 25, %s2706_s28 }
  0x16   : > { %270 = vmatpush.msra.mxu0 %v209_v1  ;;  %2492 = vmatpush.msra.mxu1 %v209_v1  ;;  %s185_s6 = scalar_lea.vmem %s4220_s0, %s2428_s30  ;;  %v2626_v60 = vmov 1326507024   ;;  %p2349_p11 = scmp.lt.s32.totalorder (%p2689_p5), %s2348_s26, 13 }
  0x17   : > { %2493 = vmatpush.msra.mxu2 %v209_v1  ;;  %2494 = vmatpush.msra.mxu3 %v209_v1  ;;  %v196_v2 = vld [vmem:[%s185_s6] sm:$0xff]  ;;  %v199_v3 = vld [vmem:[%s185_s6 + $0x18] sm:$0xff]  ;;  %v197_v6 = vld [vmem:[%s185_s6 + $0x8] sm:$0xff] }
  0x18   : > { %v203_v4 = vld [vmem:[%s185_s6 + $0x38] sm:$0xff]  ;;  %2429 = vmatmul.msk.f32.vlgmr.msra.gmra.mxu0 %vm215_vm0, %v196_v2  ;;  %2432 = vmatmul.msk.f32.vlgmr.msra.gmra.mxu1 %vm215_vm0, %v199_v3  ;;  %v200_v7 = vld [vmem:[%s185_s6 + $0x20] sm:$0xff]  ;;  %v198_v10 = vld [vmem:[%s185_s6 + $0x10] sm:$0xff] }
  0x19   : > { %v207_v5 = vld [vmem:[%s185_s6 + $0x58] sm:$0xff]  ;;  %2436 = vmatmul.msk.f32.vlgmr.msra.gmra.mxu2 %vm215_vm0, %v203_v4  ;;  %v204_v8 = vld [vmem:[%s185_s6 + $0x40] sm:$0xff]  ;;  %v201_v11 = vld [vmem:[%s185_s6 + $0x28] sm:$0xff] }
  0x1a   : > { %2440 = vmatmul.msk.f32.vlgmr.msra.gmra.mxu3 %vm215_vm0, %v207_v5  ;;  %v208_v9 = vld [vmem:[%s185_s6 + $0x60] sm:$0xff]  ;;  %v205_v12 = vld [vmem:[%s185_s6 + $0x48] sm:$0xff]  ;;  %v202_v13 = vld [vmem:[%s185_s6 + $0x30] sm:$0xff] }
  0x1b   : > { %v206_v14 = vld [vmem:[%s185_s6 + $0x50] sm:$0xff] }
  0x20   : > { %2430 = vmatmul.msk.f32.gmra.mxu0 %vm215_vm0, %v197_v6  ;;  %2433 = vmatmul.msk.f32.gmra.mxu1 %vm215_vm0, %v200_v7 }
  0x21   : > { %2437 = vmatmul.msk.f32.gmra.mxu2 %vm215_vm0, %v204_v8 }
  0x22   : > { %2441 = vmatmul.msk.f32.gmra.mxu3 %vm215_vm0, %v208_v9 }
  0x28   : > { %2431 = vmatmul.msk.f32.gmra.mxu0 %vm215_vm0, %v198_v10  ;;  %2434 = vmatmul.msk.f32.gmra.mxu1 %vm215_vm0, %v201_v11 }
  0x29   : > { %2438 = vmatmul.msk.f32.gmra.mxu2 %vm215_vm0, %v205_v12 }
  0x30   : > { %2435 = vmatmul.msk.f32.gmra.mxu1 %vm215_vm0, %v202_v13 }
  0x31   : > { %2439 = vmatmul.msk.f32.gmra.mxu2 %vm215_vm0, %v206_v14 }
  0x95   : > { %v272_v16 = vpop.f32.mrf.mxu0  ;;  %v281_v17 = vpop.f32.mrf.mxu1 }
  0x96   : > { %v2733_v18 = vadd.f32 %v2730_v15, %v272_v16  ;;  %v2736_v19 = vadd.f32 %v2730_v15, %v281_v17 }
  0x98   : > { %v311_v20 = vand.u32 2147483647, %v2733_v18  ;;  %v314_v21 = vand.u32 2139095040, %v2733_v18  ;;  %v776_v22 = vand.u32 2147483647, %v2736_v19  ;;  %v779_v23 = vand.u32 2139095040, %v2736_v19 }
  0x9a   : > { %v315_v24 = vshrl.u32 %v314_v21, 23  ;;  %v318_v25 = vand.u32 8388607, %v311_v20  ;;  %v780_v26 = vshrl.u32 %v779_v23, 23  ;;  %v783_v30 = vand.u32 8388607, %v776_v22 }
  0x9c   : > { %v2442_v27 = vadd.s32 4294967169, %v315_v24  ;;  %v319_v28 = vor.u32 8388608, %v318_v25  ;;  %v2451_v29 = vadd.s32 4294967169, %v780_v26  ;;  %v293_v33 = vpop.f32.mrf.mxu2  ;;  %v784_v36 = vor.u32 8388608, %v783_v30 }
  0x9d   : > { %v2753_v41 = vadd.f32 %v2730_v15, %v293_v33 }
  0x9e   : > { %v321_v31 = vadd.s32 1, %v2442_v27  ;;  %v786_v32 = vadd.s32 1, %v2451_v29  ;;  %v2746_v35 = vshll.u32 %v319_v28, 8  ;;  %v2761_v54 = vshll.u32 %v784_v36, 8 }
  0x9f   : > { %v1399_v4 = vand.u32 2139095040, %v2753_v41 }
  0xa0   : > { %vm322_vm1 = vcmp.gt.s32.totalorder %v321_v31, 0  ;;  %vm787_vm2 = vcmp.gt.s32.totalorder %v786_v32, 0  ;;  %v360_v53 = vand.u32 65535, %v2746_v35  ;;  %v361_v58 = vshrl.u32 %v2746_v35, 16 }
  0xa1   : > { %v323_v34 = vsel %vm322_vm1, %v321_v31, 0  ;;  %v788_v38 = vsel %vm787_vm2, %v786_v32, 0  ;;  %v2805_v24 = vand.u32 65535, %v2761_v54 }
  0xa2   : > { %v325_v37 = vand.u32 31, %v323_v34  ;;  %v2748_v39 = vshrl.u32 %v323_v34, 5  ;;  %v2750_v40 = vand.u32 31, %v788_v38  ;;  %v2811_v31 = vshrl.u32 %v788_v38, 5 }
  0xa4   : > { %v326_v42 = vsub.s32 32, %v325_v37  ;;  %v328_v44 = vshll.u32 %v2621_v43, %v325_v37  ;;  %v331_v46 = vshll.u32 %v2622_v45, %v325_v37  ;;  %v334_v48 = vshll.u32 %v2623_v47, %v325_v37 }
  0xa5   : > { %v337_v50 = vshll.u32 %v2624_v49, %v325_v37  ;;  %v340_v52 = vshll.u32 %v2625_v51, %v325_v37  ;;  %vm343_vm3 = vcmp.lt.s32.totalorder %v2748_v39, 1  ;;  %vm346_vm4 = vcmp.lt.s32.totalorder %v2748_v39, 4 }
  0xa6   : > { %v329_v55 = vshrl.u32 %v2622_v45, %v326_v42  ;;  %v332_v56 = vshrl.u32 %v2623_v47, %v326_v42  ;;  %v335_v57 = vshrl.u32 %v2624_v49, %v326_v42  ;;  %v338_v59 = vshrl.u32 %v2625_v51, %v326_v42 }
  0xa7   : > { %v341_v61 = vshrl.u32 %v2626_v60, %v326_v42  ;;  %v2772_v1 = vsub.s32 32, %v2750_v40  ;;  %vm345_vm5 = vcmp.lt.s32.totalorder %v2748_v39, 3  ;;  %v327_v5 = vshrl.u32 %v2621_v43, %v326_v42 }
  0xa8   : > { %v330_v62 = vor.u32 %v329_v55, %v328_v44  ;;  %v333_v63 = vor.u32 %v332_v56, %v331_v46  ;;  %v336_v0 = vor.u32 %v335_v57, %v334_v48  ;;  %v339_v2 = vor.u32 %v338_v59, %v337_v50 }
  0xa9   : > { %v342_v3 = vor.u32 %v341_v61, %v340_v52  ;;  %vm344_vm6 = vcmp.lt.s32.totalorder %v2748_v39, 2  ;;  %v793_v10 = vshll.u32 %v2621_v43, %v2750_v40  ;;  %v796_v11 = vshll.u32 %v2622_v45, %v2750_v40 }
  0xaa   : > { %v351_v6 = vsel %vm343_vm3, %v330_v62, %v333_v63  ;;  %v355_v7 = vsel %vm343_vm3, %v333_v63, %v336_v0  ;;  %v352_v8 = vsel %vm346_vm4, %v339_v2, 920167782  ;;  %v348_v12 = vsel %vm346_vm4, %v336_v0, 2102212464 }
  0xab   : > { %v356_v9 = vsel %vm346_vm4, %v342_v3, 1326507024  ;;  %v353_v13 = vsel %vm345_vm5, %v336_v0, %v352_v8  ;;  %v794_v16 = vshrl.u32 %v2622_v45, %v2772_v1  ;;  %v797_v23 = vshrl.u32 %v2623_v47, %v2772_v1 }
  0xac   : > { %v357_v14 = vsel %vm345_vm5, %v339_v2, %v356_v9  ;;  %v354_v17 = vsel %vm344_vm6, %v351_v6, %v353_v13  ;;  %v347_v29 = vsel %vm343_vm3, %v327_v5, %v330_v62  ;;  %v349_v30 = vsel %vm345_vm5, %v333_v63, %v348_v12 }
  0xad   : > { %v358_v21 = vsel %vm344_vm6, %v355_v7, %v357_v14  ;;  %v384_v27 = vand.u32 65535, %v354_v17  ;;  %v385_v28 = vshrl.u32 %v354_v17, 16  ;;  %v2813_v32 = vor.u32 %v794_v16, %v793_v10 }
  0xae   : > { %v362_v25 = vand.u32 65535, %v358_v21  ;;  %v363_v26 = vshrl.u32 %v358_v21, 16  ;;  %v2815_v37 = vor.u32 %v797_v23, %v796_v11  ;;  %v799_v48 = vshll.u32 %v2623_v47, %v2750_v40 }
  0xaf   : > { %v386_v42 = vmul.u32 %v384_v27, %v360_v53  ;;  %v387_v44 = vmul.u32 %v385_v28, %v360_v53  ;;  %v388_v46 = vmul.u32 %v384_v27, %v361_v58  ;;  %v800_v38 = vshrl.u32 %v2624_v49, %v2772_v1 }
  0xb0   : > { %v364_v33 = vmul.u32 %v362_v25, %v360_v53  ;;  %v365_v34 = vmul.u32 %v363_v26, %v360_v53  ;;  %v366_v36 = vmul.u32 %v362_v25, %v361_v58  ;;  %v367_v50 = vmul.u32 %v363_v26, %v361_v58 }
  0xb1   : > { %v389_v57 = vmul.u32 %v385_v28, %v361_v58  ;;  %v390_v59 = vshll.u32 %v387_v44, 16  ;;  %v392_v61 = vshll.u32 %v388_v46, 16  ;;  %v802_v53 = vshll.u32 %v2624_v49, %v2750_v40 }
  0xb2   : > { %v368_v52 = vshll.u32 %v365_v34, 16  ;;  %v370_v55 = vshll.u32 %v366_v36, 16  ;;  %v369_v56 = vshrl.u32 %v365_v34, 16  ;;  %v371_v62 = vshrl.u32 %v366_v36, 16 }
  0xb3   : > { %v2627_v0 = vmov 0   ;;  %vm394_vm8 = vc.u32 %v386_v42, %v390_v59  ;;  %v396_v3 = vadd.s32 %v390_v59, %v386_v42  ;;  %v803_v5 = vshrl.u32 %v2625_v51, %v2772_v1 }
  0xb4   : > { %vm372_vm7 = vc.u32 %v364_v33, %v368_v52  ;;  %v374_v63 = vadd.s32 %v368_v52, %v364_v33  ;;  %v395_v58 = vsel %vm394_vm8, 1, %v2627_v0  ;;  %v805_v7 = vshll.u32 %v2625_v51, %v2750_v40 }
  0xb5   : > { %v373_v2 = vsel %vm372_vm7, 1, %v2627_v0  ;;  %v397_v9 = vadd.s32 %v395_v58, %v389_v57  ;;  %vm398_vm10 = vc.u32 %v396_v3, %v392_v61  ;;  %v801_v10 = vor.u32 %v800_v38, %v799_v48 }
  0xb6   : > { %v375_v6 = vadd.s32 %v373_v2, %v367_v50  ;;  %vm376_vm9 = vc.u32 %v374_v63, %v370_v55  ;;  %v399_v12 = vsel %vm398_vm10, 1, %v2627_v0  ;;  %v804_v13 = vor.u32 %v803_v5, %v802_v53 }
  0xb7   : > { %v377_v8 = vsel %vm376_vm9, 1, %v2627_v0  ;;  %v806_v14 = vshrl.u32 %v2626_v60, %v2772_v1  ;;  %v391_v16 = vshrl.u32 %v387_v44, 16  ;;  %v401_v17 = vadd.s32 %v399_v12, %v397_v9 }
  0xb8   : > { %v379_v11 = vadd.s32 %v377_v8, %v375_v6  ;;  %vm808_vm11 = vcmp.lt.s32.totalorder %v2811_v31, 1  ;;  %vm810_vm12 = vcmp.lt.s32.totalorder %v2811_v31, 3  ;;  %v393_v40 = vshrl.u32 %v388_v46, 16 }
  0xb9   : > { %v807_v23 = vor.u32 %v806_v14, %v805_v7  ;;  %vm811_vm13 = vcmp.lt.s32.totalorder %v2811_v31, 4  ;;  %v2836_v25 = vadd.s32 %v396_v3, %v392_v61  ;;  %v402_v26 = vadd.s32 %v401_v17, %v391_v16 }
  0xba   : > { %v380_v21 = vadd.s32 %v379_v11, %v369_v56  ;;  %v816_v27 = vsel %vm808_vm11, %v2813_v32, %v2815_v37  ;;  %v817_v28 = vsel %vm811_vm13, %v804_v13, 920167782  ;;  %vm809_vm14 = vcmp.lt.s32.totalorder %v2811_v31, 2 }
  0xbb   : > { %v818_v34 = vsel %vm810_vm12, %v801_v10, %v817_v28  ;;  %v820_v36 = vsel %vm808_vm11, %v2815_v37, %v801_v10  ;;  %v350_v42 = vsel %vm344_vm6, %v347_v29, %v349_v30  ;;  %v403_v44 = vadd.s32 %v402_v26, %v393_v40 }
  0xbc   : > { %v2844_v33 = vadd.s32 %v380_v21, %v371_v62  ;;  %v819_v46 = vsel %vm809_vm14, %v816_v27, %v818_v34  ;;  %v821_v48 = vsel %vm811_vm13, %v807_v23, 1326507024  ;;  %v826_v52 = vshrl.u32 %v2761_v54, 16 }
  0xbd   : > { %v822_v50 = vsel %vm810_vm12, %v804_v13, %v821_v48  ;;  %v849_v55 = vand.u32 65535, %v819_v46  ;;  %v407_v38 = vadd.s32 1, %v403_v44  ;;  %v850_v29 = vshrl.u32 %v819_v46, 16 }
  0xbe   : > { %vm406_vm15 = vc.u32 %v2844_v33, %v2836_v25  ;;  %v823_v39 = vsel %vm809_vm14, %v820_v36, %v822_v50  ;;  %v1400_v30 = vshrl.u32 %v1399_v4, 23  ;;  %v404_v56 = vmul.u32 %v2746_v35, %v350_v42 }
  0xbf   : > { %v827_v57 = vand.u32 65535, %v823_v39  ;;  %v828_v59 = vshrl.u32 %v823_v39, 16  ;;  %v1396_v61 = vand.u32 2147483647, %v2753_v41  ;;  %v408_v62 = vsel %vm406_vm15, %v407_v38, %v403_v44 }
  0xc0   : > { %v792_v63 = vshrl.u32 %v2621_v43, %v2772_v1  ;;  %v852_v53 = vmul.u32 %v850_v29, %v2805_v24  ;;  %v853_v2 = vmul.u32 %v849_v55, %v826_v52  ;;  %v409_v3 = vadd.s32 %v408_v62, %v404_v56 }
  0xc1   : > { %v813_v5 = vsel %vm811_vm13, %v801_v10, 2102212464  ;;  %v830_v6 = vmul.u32 %v828_v59, %v2805_v24  ;;  %v831_v4 = vmul.u32 %v827_v57, %v826_v52  ;;  %v851_v35 = vmul.u32 %v849_v55, %v2805_v24 }
  0xc2   : > { %v854_v58 = vmul.u32 %v850_v29, %v826_v52  ;;  %v855_v7 = vshll.u32 %v852_v53, 16  ;;  %v2463_v8 = vadd.s32 4294967169, %v1400_v30  ;;  %v410_v9 = vadd.s32 536870912, %v409_v3 }
  0xc3   : > { %v829_v11 = vmul.u32 %v827_v57, %v2805_v24  ;;  %v832_v12 = vmul.u32 %v828_v59, %v826_v52  ;;  %v833_v1 = vshll.u32 %v830_v6, 16  ;;  %v835_v13 = vshll.u32 %v831_v4, 16 }
  0xc4   : > { %v857_v14 = vshll.u32 %v853_v2, 16  ;;  %vm859_vm0 = vc.u32 %v851_v35, %v855_v7  ;;  %v861_v16 = vadd.s32 %v855_v7, %v851_v35  ;;  %v411_v17 = vshrl.u32 %v410_v9, 30 }
  0xc5   : > { %vm837_vm1 = vc.u32 %v829_v11, %v833_v1  ;;  %v839_v10 = vadd.s32 %v833_v1, %v829_v11  ;;  %v860_v21 = vsel %vm859_vm0, 1, %v2627_v0  ;;  %v1403_v26 = vand.u32 8388607, %v1396_v61 }
  0xc6   : > { %v838_v40 = vsel %vm837_vm1, 1, %v2627_v0  ;;  %v862_v23 = vadd.s32 %v860_v21, %v854_v58  ;;  %vm863_vm2 = vc.u32 %v861_v16, %v857_v14  ;;  %v412_v27 = vshll.u32 %v411_v17, 30 }
  0xc7   : > { %v812_v24 = vsel %vm808_vm11, %v792_v63, %v2813_v32  ;;  %v840_v28 = vadd.s32 %v838_v40, %v832_v12  ;;  %vm841_vm3 = vc.u32 %v839_v10, %v835_v13  ;;  %v814_v34 = vsel %vm810_vm12, %v2815_v37, %v813_v5 }
  0xc8   : > { %v842_v36 = vsel %vm841_vm3, 1, %v2627_v0  ;;  %v864_v42 = vsel %vm863_vm2, 1, %v2627_v0  ;;  %v1406_v44 = vadd.s32 1, %v2463_v8  ;;  %v413_v46 = vsub.s32 %v409_v3, %v412_v27 }
  0xc9   : > { %v834_v48 = vshrl.u32 %v830_v6, 16  ;;  %v844_v50 = vadd.s32 %v842_v36, %v840_v28  ;;  %v866_v52 = vadd.s32 %v864_v42, %v862_v23  ;;  %vm313_vm4 = vcmp.lt.s32.totalorder %v2733_v18, 0 }
  0xca   : > { %v435_v55 = vsub.s32 4, %v411_v17  ;;  %v856_v38 = vshrl.u32 %v852_v53, 16  ;;  %vm1407_vm5 = vcmp.gt.s32.totalorder %v1406_v44, 0  ;;  %vm414_vm6 = vcmp.lt.s32.totalorder %v413_v46, 0 }
  0xcb   : > { %v415_v32 = vsub.s32 0, %v413_v46  ;;  %v836_v39 = vshrl.u32 %v831_v4, 16  ;;  %v845_v29 = vadd.s32 %v844_v50, %v834_v48  ;;  %v815_v37 = vsel %vm809_vm14, %v812_v24, %v814_v34 }
  0xcc   : > { %v858_v30 = vshrl.u32 %v853_v2, 16  ;;  %v867_v56 = vadd.s32 %v866_v52, %v856_v38  ;;  %v1408_v57 = vsel %vm1407_vm5, %v1406_v44, 0  ;;  %v2894_v63 = vadd.s32 %v861_v16, %v857_v14 }
  0xcd   : > { %v416_v59 = vsel %vm414_vm6, %v415_v32, %v413_v46  ;;  %v2892_v62 = vadd.s32 %v845_v29, %v836_v39  ;;  %v1404_v3 = vor.u32 8388608, %v1403_v26  ;;  %v436_v53 = vsel %vm313_vm4, %v435_v55, %v411_v17 }
  0xce   : > { %v417_v5 = vclz %v416_v59  ;;  %v868_v6 = vadd.s32 %v867_v56, %v858_v30  ;;  %v1410_v35 = vand.u32 31, %v1408_v57  ;;  %vm2900_vm7 = vcmp.le.f32.partialorder %v311_v20, 0.7853982 }
  0xcf   : > { %v405_v2 = vadd.s32 %v2836_v25, %v2844_v33  ;;  %v869_v4 = vmul.u32 %v2761_v54, %v815_v37  ;;  %vm871_vm8 = vc.u32 %v2892_v62, %v2894_v63  ;;  %v438_v9 = vsel %vm2900_vm7, 0, %v436_v53 }
  0xd0   : > { %v2443_v58 = vadd.s32 4294967294, %v417_v5  ;;  %v872_v7 = vadd.s32 1, %v868_v6  ;;  %v1411_v8 = vsub.s32 32, %v1410_v35  ;;  %v2911_v11 = vshrl.u32 %v1408_v57, 5 }
  0xd1   : > { %v1413_v20 = vshll.u32 %v2621_v43, %v1410_v35  ;;  %v2914_v12 = vshll.u32 %v1404_v3, 8  ;;  %v1416_v54 = vshll.u32 %v2622_v45, %v1410_v35  ;;  %v1419_v16 = vshll.u32 %v2623_v47, %v1410_v35 }
  0xd2   : > { %vm2444_vm9 = vcmp.lt.s32.totalorder %v2443_v58, 0  ;;  %v873_v1 = vsel %vm871_vm8, %v872_v7, %v868_v6  ;;  %v1414_v25 = vshrl.u32 %v2622_v45, %v1411_v8  ;;  %v1417_v14 = vshrl.u32 %v2623_v47, %v1411_v8 }
  0xd3   : > { %v420_v33 = vsel %vm2444_vm9, 0, %v2443_v58  ;;  %v874_v13 = vadd.s32 %v873_v1, %v869_v4  ;;  %v1420_v21 = vshrl.u32 %v2624_v49, %v1411_v8  ;;  %v1422_v40 = vshll.u32 %v2624_v49, %v1410_v35  ;;  %v305_v1 = vpop.f32.mrf.mxu3 }
  0xd4   : > { %v421_v17 = vsub.s32 32, %v420_v33  ;;  %v425_v10 = vsub.s32 4294967266, %v420_v33  ;;  %v422_v23 = vshll.u32 %v413_v46, %v420_v33  ;;  %v1415_v27 = vor.u32 %v1414_v25, %v1413_v20 }
  0xd5   : > { %v875_v26 = vadd.s32 536870912, %v874_v13  ;;  %v1423_v24 = vshrl.u32 %v2625_v51, %v1411_v8  ;;  %v1418_v36 = vor.u32 %v1417_v14, %v1416_v54  ;;  %v1426_v42 = vshrl.u32 %v2626_v60, %v1411_v8 }
  0xd6   : > { %v423_v28 = vshrl.u32 %v405_v2, %v421_v17  ;;  %v426_v34 = vadd.s32 127, %v425_v10  ;;  %v455_v44 = vadd.s32 3, %v438_v9  ;;  %v1421_v38 = vor.u32 %v1420_v21, %v1419_v16 }
  0xd7   : > { %v876_v48 = vshrl.u32 %v875_v26, 30  ;;  %v1424_v50 = vor.u32 %v1423_v24, %v1422_v40  ;;  %v1425_v32 = vshll.u32 %v2625_v51, %v1410_v35  ;;  %vm778_vm10 = vcmp.lt.s32.totalorder %v2736_v19, 0 }
  0xd8   : > { %v424_v52 = vor.u32 %v423_v28, %v422_v23  ;;  %v427_v55 = vshll.u32 %v426_v34, 23  ;;  %vm1428_vm11 = vcmp.lt.s32.totalorder %v2911_v11, 1  ;;  %v1445_v39 = vand.u32 65535, %v2914_v12 }
  0xd9   : > { %v877_v46 = vshll.u32 %v876_v48, 30  ;;  %v1446_v29 = vshrl.u32 %v2914_v12, 16  ;;  %v1427_v30 = vor.u32 %v1426_v42, %v1425_v32  ;;  %vm1431_vm12 = vcmp.lt.s32.totalorder %v2911_v11, 4 }
  0xda   : > { %v428_v37 = vor.u32 4788187, %v427_v55  ;;  %v1436_v56 = vsel %vm1428_vm11, %v1415_v27, %v1418_v36  ;;  %v2932_v57 = vand.u32 3, %v455_v44  ;;  %vm1430_vm13 = vcmp.lt.s32.totalorder %v2911_v11, 3 }
  0xdb   : > { %v2934_v59 = vsub.s32 %v874_v13, %v877_v46  ;;  %v1437_v3 = vsel %vm1431_vm12, %v1424_v50, 920167782  ;;  %v431_v53 = vcvt.s32.f32 %v424_v52  ;;  %vm1429_vm14 = vcmp.lt.s32.totalorder %v2911_v11, 2 }
  0xdc   : > { %v429_v5 = vand.u32 2147483647, %v428_v37  ;;  %v1438_v6 = vsel %vm1430_vm13, %v1421_v38, %v1437_v3  ;;  %v1412_v2 = vshrl.u32 %v2621_v43, %v1411_v8  ;;  %v900_v7 = vsub.s32 4, %v876_v48 }
  0xdd   : > { %vm879_vm15 = vcmp.lt.s32.totalorder %v2934_v59, 0  ;;  %v880_v35 = vsub.s32 0, %v2934_v59  ;;  %v1439_v4 = vsel %vm1429_vm14, %v1436_v56, %v1438_v6  ;;  %v1440_v9 = vsel %vm1428_vm11, %v1418_v36, %v1421_v38 }
  0xde   : > { %v432_v58 = vmul.f32 %v431_v53, %v429_v5  ;;  %v1441_v20 = vsel %vm1431_vm12, %v1427_v30, 1326507024  ;;  %v1433_v54 = vsel %vm1431_vm12, %v1421_v38, 2102212464  ;;  %v1469_v33 = vand.u32 65535, %v1439_v4 }
  0xdf   : > { %v881_v25 = vsel %vm879_vm15, %v880_v35, %v2934_v59  ;;  %v1442_v8 = vsel %vm1430_vm13, %v1424_v50, %v1441_v20  ;;  %v1470_v17 = vshrl.u32 %v1439_v4, 16  ;;  %v870_v10 = vadd.s32 %v2894_v63, %v2892_v62 }
  0xe0   : > { %v433_v13 = vxor.u32 2147483648, %v432_v58  ;;  %v882_v14 = vclz %v881_v25  ;;  %v1443_v16 = vsel %vm1429_vm14, %v1440_v9, %v1442_v8  ;;  %v2962_v21 = vsel %vm1428_vm11, %v1412_v2, %v1415_v27 }
  0xe1   : > { %v1447_v40 = vand.u32 65535, %v1443_v16  ;;  %v2965_v23 = vadd.f32 %v2730_v15, %v305_v1  ;;  %v2971_v28 = vsel %vm778_vm10, %v900_v7, %v876_v48  ;;  %v1448_v34 = vshrl.u32 %v1443_v16, 16 }
  0xe2   : > { %v434_v26 = vsel %vm313_vm4, %v433_v13, %v432_v58  ;;  %v2452_v24 = vadd.s32 4294967294, %v882_v14  ;;  %v2980_v63 = vsel %vm1430_vm13, %v1418_v36, %v1433_v54  ;;  %v1471_v42 = vmul.u32 %v1469_v33, %v1445_v39 }
  0xe3   : > { %v2976_v62 = vsel %vm2900_vm7, %v2733_v18, %v434_v26  ;;  %v1451_v27 = vmul.u32 %v1447_v40, %v1446_v29  ;;  %v1450_v50 = vmul.u32 %v1448_v34, %v1445_v39  ;;  %v2984_v52 = vmul.u32 %v1470_v17, %v1445_v39 }
  0xe4   : > { %v439_v44 = vmul.f32 %v2976_v62, %v2976_v62  ;;  %vm2453_vm0 = vcmp.lt.s32.totalorder %v2452_v24, 0  ;;  %v1449_v55 = vmul.u32 %v1447_v40, %v1445_v39  ;;  %v1452_v38 = vmul.u32 %v1448_v34, %v1446_v29 }
  0xe5   : > { %v885_v48 = vsel %vm2453_vm0, 0, %v2452_v24  ;;  %v2986_v32 = vmul.u32 %v1469_v33, %v1446_v29  ;;  %v1455_v30 = vshll.u32 %v1451_v27, 16  ;;  %v1453_v56 = vshll.u32 %v1450_v50, 16 }
  0xe6   : > { %v440_v31 = vmul.f32 -0.001358992, %v439_v44  ;;  %v447_v46 = vmul.f32 -0.00019511016, %v439_v44  ;;  %v886_v37 = vsub.s32 32, %v885_v48  ;;  %v890_v36 = vsub.s32 4294967266, %v885_v48 }
  0xe7   : > { %v1456_v3 = vshrl.u32 %v1451_v27, 16  ;;  %v1474_v5 = vmul.u32 %v1470_v17, %v1446_v29  ;;  %v887_v35 = vshll.u32 %v2934_v59, %v885_v48  ;;  %vm1457_vm1 = vc.u32 %v1449_v55, %v1453_v56 }
  0xe8   : > { %v441_v53 = vadd.f32 0.041655596, %v440_v31  ;;  %v448_v6 = vadd.f32 0.008332121, %v447_v46  ;;  %v888_v2 = vshrl.u32 %v870_v10, %v886_v37  ;;  %v891_v4 = vadd.s32 127, %v890_v36 }
  0xe9   : > { %v1459_v58 = vadd.s32 %v1453_v56, %v1449_v55  ;;  %v1475_v39 = vshll.u32 %v2984_v52, 16  ;;  %v1458_v1 = vsel %vm1457_vm1, 1, %v2627_v0  ;;  %vm2993_vm2 = vcmp.le.f32.partialorder %v776_v22, 0.7853982 }
  0xea   : > { %v442_v7 = vmul.f32 %v441_v53, %v439_v44  ;;  %v449_v9 = vmul.f32 %v448_v6, %v439_v44  ;;  %v889_v20 = vor.u32 %v888_v2, %v887_v35  ;;  %v892_v29 = vshll.u32 %v891_v4, 23 }
  0xeb   : > { %v1454_v54 = vshrl.u32 %v1450_v50, 16  ;;  %v1460_v59 = vadd.s32 %v1458_v1, %v1452_v38  ;;  %vm1461_vm3 = vc.u32 %v1459_v58, %v1455_v30  ;;  %v1477_v14 = vshll.u32 %v2986_v32, 16 }
  0xec   : > { %v443_v8 = vadd.f32 -0.4999988, %v442_v7  ;;  %v450_v33 = vadd.f32 -0.16666654, %v449_v9  ;;  %v1462_v13 = vsel %vm1461_vm3, 1, %v2627_v0  ;;  %vm458_vm4 = vcmp.eq.s32.totalorder %v2932_v57, 0 }
  0xed   : > { %v893_v16 = vor.u32 4788187, %v892_v29  ;;  %v1464_v17 = vadd.s32 %v1462_v13, %v1460_v59  ;;  %vm1479_vm5 = vc.u32 %v1471_v42, %v1475_v39  ;;  %v1481_v10 = vadd.s32 %v1475_v39, %v1471_v42 }
  0xee   : > { %v444_v22 = vmul.f32 %v443_v8, %v439_v44  ;;  %v451_v40 = vmul.f32 %v450_v33, %v439_v44  ;;  %vm457_vm6 = vcmp.lt.s32.totalorder %v2932_v57, 2  ;;  %v896_v26 = vcvt.s32.f32 %v889_v20 }
  0xef   : > { %v1480_v24 = vsel %vm1479_vm5, 1, %v2627_v0  ;;  %vm454_vm7 = vweird.f32 %v2733_v18  ;;  %v894_v34 = vand.u32 2147483647, %v893_v16  ;;  %v1465_v27 = vadd.s32 %v1464_v17, %v1454_v54 }
  0xf0   : > { %v1482_v50 = vadd.s32 %v1480_v24, %v1474_v5  ;;  %vm1483_vm8 = vc.u32 %v1481_v10, %v1477_v14  ;;  %v445_v48 = vadd.f32 1.0, %v444_v22  ;;  %v452_v55 = vadd.f32 1.0, %v451_v40 }
  0xf1   : > { %v1476_v38 = vshrl.u32 %v2984_v52, 16  ;;  %v1484_v42 = vsel %vm1483_vm8, 1, %v2627_v0  ;;  %v897_v31 = vmul.f32 %v896_v26, %v894_v34  ;;  %v1466_v44 = vadd.s32 %v1465_v27, %v1456_v3 }
  0xf2   : > { %v1486_v46 = vadd.s32 %v1484_v42, %v1482_v50  ;;  %v2016_v37 = vand.u32 2147483647, %v2965_v23  ;;  %v453_v30 = vmul.f32 %v452_v55, %v2976_v62  ;;  %vm461_vm9 = vcmp.eq.s32.totalorder %v2932_v57, 2  ;;  %v275_v57 = vpop.f32.mrf.mxu0 }
  0xf3   : > { %v462_v36 = vxor.u32 2147483648, %v445_v48  ;;  %v2019_v56 = vand.u32 2139095040, %v2965_v23  ;;  %v898_v5 = vxor.u32 2147483648, %v897_v31  ;;  %v1478_v53 = vshrl.u32 %v2986_v32, 16 }
  0xf4   : > { %v1485_v52 = vadd.s32 %v1481_v10, %v1477_v14  ;;  %v1487_v6 = vadd.s32 %v1486_v46, %v1476_v38  ;;  %v459_v35 = vxor.u32 2147483648, %v453_v30  ;;  %v903_v3 = vsel %vm2993_vm2, 0, %v2971_v28 }
  0xf5   : > { %v1435_v62 = vsel %vm1429_vm14, %v2962_v21, %v2980_v63  ;;  %v2020_v2 = vshrl.u32 %v2019_v56, 23  ;;  %v899_v4 = vsel %vm778_vm10, %v898_v5, %v897_v31  ;;  %v2023_v32 = vand.u32 8388607, %v2016_v37 }
  0xf6   : > { %v1488_v58 = vadd.s32 %v1487_v6, %v1478_v53  ;;  %vm1491_vm11 = vc.u32 %v1466_v44, %v1485_v52  ;;  %v460_v39 = vsel %vm458_vm4, %v445_v48, %v459_v35  ;;  %v463_v28 = vsel %vm461_vm9, %v462_v36, %v453_v30 }
  0xf7   : > { %v902_v11 = vsel %vm2993_vm2, %v2736_v19, %v899_v4  ;;  %v2475_v21 = vadd.s32 4294967169, %v2020_v2  ;;  %v464_v63 = vsel %vm457_vm6, %v460_v39, %v463_v28  ;;  %v920_v9 = vadd.s32 3, %v903_v3 }
  0xf8   : > { %v904_v7 = vmul.f32 %v902_v11, %v902_v11  ;;  %v1492_v20 = vadd.s32 1, %v1488_v58  ;;  %v465_v1 = vsel %vm454_vm7, nan, %v464_v63  ;;  %v1489_v29 = vmul.u32 %v2914_v12, %v1435_v62 }
  0xf9   : > { %v2024_v54 = vor.u32 8388608, %v2023_v32  ;;  %v2026_v59 = vadd.s32 1, %v2475_v21  ;;  %2326 = vst [vmem:[%s3035_s11] sm:$0xff] %v465_v1  ;;  %v921_v17 = vand.u32 3, %v920_v9  ;;  %v3042_v40 = vadd.f32 %v2730_v15, %v275_v57 }
  0xfa   : > { %v905_v25 = vmul.f32 -0.001358992, %v904_v7  ;;  %v912_v8 = vmul.f32 -0.00019511016, %v904_v7  ;;  %v1493_v33 = vsel %vm1491_vm11, %v1492_v20, %v1488_v58  ;;  %vm1398_vm12 = vcmp.lt.s32.totalorder %v2753_v41, 0 }
  0xfb   : > { %v1494_v13 = vadd.s32 %v1493_v33, %v1489_v29  ;;  %vm2027_vm10 = vcmp.gt.s32.totalorder %v2026_v59, 0  ;;  %v3039_v12 = vshll.u32 %v2024_v54, 8  ;;  %vm926_vm13 = vcmp.eq.s32.totalorder %v921_v17, 2 }
  0xfc   : > { %v906_v14 = vadd.f32 0.041655596, %v905_v25  ;;  %v913_v16 = vadd.f32 0.008332121, %v912_v8  ;;  %v2028_v18 = vsel %vm2027_vm10, %v2026_v59, 0  ;;  %v3051_v38 = vadd.s32 %v1485_v52, %v1466_v44 }
  0xfd   : > { %v1495_v10 = vadd.s32 536870912, %v1494_v13  ;;  %v2030_v22 = vand.u32 31, %v2028_v18  ;;  %vm3047_vm14 = vcmp.le.f32.partialorder %v1396_v61, 0.7853982  ;;  %v466_v15 = vand.u32 2147483647, %v3042_v40 }
  0xfe   : > { %v907_v26 = vmul.f32 %v906_v14, %v904_v7  ;;  %v914_v24 = vmul.f32 %v913_v16, %v904_v7  ;;  %vm923_vm15 = vcmp.eq.s32.totalorder %v921_v17, 0  ;;  %v3056_v46 = vand.u32 65535, %v3039_v12 }
  0xff   : > { %v1496_v34 = vshrl.u32 %v1495_v10, 30  ;;  %v2031_v27 = vsub.s32 32, %v2030_v22  ;;  %v2033_v31 = vshll.u32 %v2621_v43, %v2030_v22  ;;  %v469_v30 = vand.u32 2139095040, %v3042_v40 }
 0x100   : > { %v908_v50 = vadd.f32 -0.4999988, %v907_v26  ;;  %v915_v48 = vadd.f32 -0.16666654, %v914_v24  ;;  %vm922_vm0 = vcmp.lt.s32.totalorder %v921_v17, 2  ;;  %vm919_vm1 = vweird.f32 %v2736_v19 }
 0x101   : > { %v1497_v42 = vshll.u32 %v1496_v34, 30  ;;  %v1520_v61 = vsub.s32 4, %v1496_v34  ;;  %v2034_v5 = vshrl.u32 %v2622_v45, %v2031_v27  ;;  %v3061_v53 = vshrl.u32 %v2028_v18, 5 }
 0x102   : > { %v909_v36 = vmul.f32 %v908_v50, %v904_v7  ;;  %v916_v56 = vmul.f32 %v915_v48, %v904_v7  ;;  %v2036_v52 = vshll.u32 %v2622_v45, %v2030_v22  ;;  %v2037_v6 = vshrl.u32 %v2623_v47, %v2031_v27 }
 0x103   : > { %v1498_v44 = vsub.s32 %v1494_v13, %v1497_v42  ;;  %v2042_v62 = vshll.u32 %v2624_v49, %v2030_v22  ;;  %v2043_v2 = vshrl.u32 %v2625_v51, %v2031_v27  ;;  %v2039_v58 = vshll.u32 %v2623_v47, %v2030_v22 }
 0x104   : > { %v910_v35 = vadd.f32 1.0, %v909_v36  ;;  %v917_v3 = vadd.f32 1.0, %v916_v56  ;;  %v2040_v32 = vshrl.u32 %v2624_v49, %v2031_v27  ;;  %v1521_v21 = vsel %vm1398_vm12, %v1520_v61, %v1496_v34 }
 0x105   : > { %vm1499_vm2 = vcmp.lt.s32.totalorder %v1498_v44, 0  ;;  %v1500_v4 = vsub.s32 0, %v1498_v44  ;;  %v2035_v63 = vor.u32 %v2034_v5, %v2033_v31  ;;  %v2038_v9 = vor.u32 %v2037_v6, %v2036_v52 }
 0x106   : > { %v918_v39 = vmul.f32 %v917_v3, %v902_v11  ;;  %v927_v28 = vxor.u32 2147483648, %v910_v35  ;;  %v2045_v20 = vshll.u32 %v2625_v51, %v2030_v22  ;;  %v2046_v1 = vshrl.u32 %v2626_v60, %v2031_v27 }
 0x107   : > { %v1501_v7 = vsel %vm1499_vm2, %v1500_v4, %v1498_v44  ;;  %v2044_v59 = vor.u32 %v2043_v2, %v2042_v62  ;;  %vm2048_vm3 = vcmp.lt.s32.totalorder %v3061_v53, 1  ;;  %v1523_v11 = vsel %vm3047_vm14, 0, %v1521_v21 }
 0x108   : > { %v924_v29 = vxor.u32 2147483648, %v918_v39  ;;  %v1502_v54 = vclz %v1501_v7  ;;  %v928_v25 = vsel %vm926_vm13, %v927_v28, %v918_v39  ;;  %v2041_v8 = vor.u32 %v2040_v32, %v2039_v58 }
 0x109   : > { %v2066_v33 = vshrl.u32 %v3039_v12, 16  ;;  %vm2050_vm4 = vcmp.lt.s32.totalorder %v3061_v53, 3  ;;  %vm2051_vm5 = vcmp.lt.s32.totalorder %v3061_v53, 4  ;;  %v2047_v16 = vor.u32 %v2046_v1, %v2045_v20 }
 0x10a   : > { %v925_v57 = vsel %vm923_vm15, %v910_v35, %v924_v29  ;;  %v2464_v13 = vadd.s32 4294967294, %v1502_v54  ;;  %vm2049_vm6 = vcmp.lt.s32.totalorder %v3061_v53, 2  ;;  %v2056_v18 = vsel %vm2048_vm3, %v2035_v63, %v2038_v9 }
 0x10b   : > { %v929_v14 = vsel %vm922_vm0, %v925_v57, %v928_v25  ;;  %v2057_v22 = vsel %vm2051_vm5, %v2044_v59, 920167782  ;;  %v470_v26 = vshrl.u32 %v469_v30, 23  ;;  %v1540_v34 = vadd.s32 3, %v1523_v11 }
 0x10c   : > { %v930_v10 = vsel %vm919_vm1, nan, %v929_v14  ;;  %vm2465_vm7 = vcmp.lt.s32.totalorder %v2464_v13, 0  ;;  %v2032_v17 = vshrl.u32 %v2621_v43, %v2031_v27  ;;  %v2058_v50 = vsel %vm2050_vm4, %v2041_v8, %v2057_v22 }
 0x10d   : > { %2329 = vst [vmem:[%s3035_s11 + $0x18] sm:$0xff] %v930_v10  ;;  %v1505_v24 = vsel %vm2465_vm7, 0, %v2464_v13  ;;  %v2059_v31 = vsel %vm2049_vm6, %v2056_v18, %v2058_v50  ;;  %v2060_v19 = vsel %vm2048_vm3, %v2038_v9, %v2041_v8  ;;  %v2053_v36 = vsel %vm2051_vm5, %v2041_v8, 2102212464 }
 0x10e   : > { %v1506_v48 = vsub.s32 32, %v1505_v24  ;;  %v1510_v42 = vsub.s32 4294967266, %v1505_v24  ;;  %v2061_v30 = vsel %vm2051_vm5, %v2047_v16, 1326507024  ;;  %v2089_v56 = vand.u32 65535, %v2059_v31 }
 0x10f   : > { %v2090_v61 = vshrl.u32 %v2059_v31, 16  ;;  %v1507_v27 = vshll.u32 %v1498_v44, %v1505_v24  ;;  %v2062_v6 = vsel %vm2050_vm4, %v2044_v59, %v2061_v30  ;;  %v2052_v44 = vsel %vm2048_vm3, %v2032_v17, %v2035_v63 }
 0x110   : > { %v1508_v5 = vshrl.u32 %v3051_v38, %v1506_v48  ;;  %v1511_v52 = vadd.s32 127, %v1510_v42  ;;  %v2063_v35 = vsel %vm2049_vm6, %v2060_v19, %v2062_v6  ;;  %v2091_v3 = vmul.u32 %v2089_v56, %v3056_v46 }
 0x111   : > { %v2092_v62 = vmul.u32 %v2090_v61, %v3056_v46  ;;  %v2093_v2 = vmul.u32 %v2089_v56, %v2066_v33  ;;  %v2067_v32 = vand.u32 65535, %v2063_v35  ;;  %v2068_v39 = vshrl.u32 %v2063_v35, 16 }
 0x112   : > { %v1509_v4 = vor.u32 %v1508_v5, %v1507_v27  ;;  %v1512_v58 = vshll.u32 %v1511_v52, 23  ;;  %v2054_v38 = vsel %vm2050_vm4, %v2038_v9, %v2053_v36  ;;  %v2094_v28 = vmul.u32 %v2090_v61, %v2066_v33 }
 0x113   : > { %v2095_v21 = vshll.u32 %v2092_v62, 16  ;;  %v2069_v20 = vmul.u32 %v2067_v32, %v3056_v46  ;;  %v2070_v1 = vmul.u32 %v2068_v39, %v3056_v46  ;;  %v2445_v29 = vadd.s32 4294967169, %v470_v26 }
 0x114   : > { %v1513_v7 = vor.u32 4788187, %v1512_v58  ;;  %v1516_v54 = vcvt.s32.f32 %v1509_v4  ;;  %v2071_v59 = vmul.u32 %v2067_v32, %v2066_v33  ;;  %v2097_v25 = vshll.u32 %v2093_v2, 16 }
 0x115   : > { %vm2099_vm8 = vc.u32 %v2091_v3, %v2095_v21  ;;  %v2072_v8 = vmul.u32 %v2068_v39, %v2066_v33  ;;  %v2073_v57 = vshll.u32 %v2070_v1, 16  ;;  %v2101_v14 = vadd.s32 %v2095_v21, %v2091_v3 }
 0x116   : > { %v1514_v11 = vand.u32 2147483647, %v1513_v7  ;;  %v2100_v63 = vsel %vm2099_vm8, 1, %v2627_v0  ;;  %v2075_v13 = vshll.u32 %v2071_v59, 16  ;;  %v3117_v16 = vand.u32 8388607, %v466_v15 }
 0x117   : > { %v2102_v9 = vadd.s32 %v2100_v63, %v2094_v28  ;;  %v3119_v10 = vand.u32 3, %v1540_v34  ;;  %vm2077_vm9 = vc.u32 %v2069_v20, %v2073_v57  ;;  %v2079_v46 = vadd.s32 %v2073_v57, %v2069_v20 }
 0x118   : > { %v1517_v18 = vmul.f32 %v1516_v54, %v1514_v11  ;;  %v2055_v22 = vsel %vm2049_vm6, %v2052_v44, %v2054_v38  ;;  %v2078_v33 = vsel %vm2077_vm9, 1, %v2627_v0  ;;  %vm2103_vm11 = vc.u32 %v2101_v14, %v2097_v25 }
 0x119   : > { %v476_v26 = vadd.s32 1, %v2445_v29  ;;  %v2080_v17 = vadd.s32 %v2078_v33, %v2072_v8  ;;  %vm2081_vm10 = vc.u32 %v2079_v46, %v2075_v13  ;;  %v2104_v50 = vsel %vm2103_vm11, 1, %v2627_v0 }
 0x11a   : > { %v1518_v24 = vxor.u32 2147483648, %v1517_v18  ;;  %v2082_v48 = vsel %vm2081_vm10, 1, %v2627_v0  ;;  %v2096_v42 = vshrl.u32 %v2092_v62, 16  ;;  %v2106_v31 = vadd.s32 %v2104_v50, %v2102_v9 }
 0x11b   : > { %vm477_vm13 = vcmp.gt.s32.totalorder %v476_v26, 0  ;;  %v2074_v19 = vshrl.u32 %v2070_v1, 16  ;;  %v2084_v53 = vadd.s32 %v2082_v48, %v2080_v17  ;;  %v2098_v56 = vshrl.u32 %v2093_v2, 16 }
 0x11c   : > { %v1519_v34 = vsel %vm1398_vm12, %v1518_v24, %v1517_v18  ;;  %v478_v36 = vsel %vm477_vm13, %v476_v26, 0  ;;  %v2107_v61 = vadd.s32 %v2106_v31, %v2096_v42  ;;  %v2076_v52 = vshrl.u32 %v2071_v59, 16 }
 0x11d   : > { %v1522_v30 = vsel %vm3047_vm14, %v2753_v41, %v1519_v34  ;;  %v480_v27 = vand.u32 31, %v478_v36  ;;  %v2085_v6 = vadd.s32 %v2084_v53, %v2074_v19  ;;  %v2109_v35 = vmul.u32 %v3039_v12, %v2055_v22 }
 0x11e   : > { %v1524_v5 = vmul.f32 %v1522_v30, %v1522_v30  ;;  %v2108_v3 = vadd.s32 %v2107_v61, %v2098_v56  ;;  %v474_v62 = vor.u32 8388608, %v3117_v16  ;;  %v3138_v55 = vadd.s32 %v2101_v14, %v2097_v25 }
 0x11f   : > { %v3133_v4 = vsub.s32 32, %v480_v27  ;;  %v483_v58 = vshll.u32 %v2621_v43, %v480_v27  ;;  %v3136_v44 = vadd.s32 %v2085_v6, %v2076_v52  ;;  %v486_v28 = vshll.u32 %v2622_v45, %v480_v27 }
 0x120   : > { %v1525_v32 = vmul.f32 -0.001358992, %v1524_v5  ;;  %v1532_v39 = vmul.f32 -0.00019511016, %v1524_v5  ;;  %v2112_v2 = vadd.s32 1, %v2108_v3  ;;  %v489_v20 = vshll.u32 %v2623_v47, %v480_v27 }
 0x121   : > { %v484_v38 = vshrl.u32 %v2622_v45, %v3133_v4  ;;  %v487_v12 = vshrl.u32 %v2623_v47, %v3133_v4  ;;  %vm2111_vm12 = vc.u32 %v3136_v44, %v3138_v55  ;;  %v3148_v29 = vshrl.u32 %v478_v36, 5 }
 0x122   : > { %v1526_v21 = vadd.f32 0.041655596, %v1525_v32  ;;  %v1533_v7 = vadd.f32 0.008332121, %v1532_v39  ;;  %v2113_v1 = vsel %vm2111_vm12, %v2112_v2, %v2108_v3  ;;  %v490_v59 = vshrl.u32 %v2624_v49, %v3133_v4 }
 0x123   : > { %v3150_v54 = vor.u32 %v484_v38, %v483_v58  ;;  %v2114_v8 = vadd.s32 %v2113_v1, %v2109_v35  ;;  %v492_v57 = vshll.u32 %v2624_v49, %v480_v27  ;;  %v3155_v63 = vor.u32 %v487_v12, %v486_v28 }
 0x124   : > { %v1527_v25 = vmul.f32 %v1526_v21, %v1524_v5  ;;  %v1534_v11 = vmul.f32 %v1533_v7, %v1524_v5  ;;  %v493_v13 = vshrl.u32 %v2625_v51, %v3133_v4  ;;  %v495_v14 = vshll.u32 %v2625_v51, %v480_v27 }
 0x125   : > { %v496_v9 = vshrl.u32 %v2626_v60, %v3133_v4  ;;  %v2115_v46 = vadd.s32 536870912, %v2114_v8  ;;  %v491_v22 = vor.u32 %v490_v59, %v489_v20  ;;  %vm498_vm14 = vcmp.lt.s32.totalorder %v3148_v29, 1 }
 0x126   : > { %v1528_v16 = vadd.f32 -0.4999988, %v1527_v25  ;;  %v1535_v18 = vadd.f32 -0.16666654, %v1534_v11  ;;  %v494_v33 = vor.u32 %v493_v13, %v492_v57  ;;  %vm500_vm15 = vcmp.lt.s32.totalorder %v3148_v29, 3 }
 0x127   : > { %v497_v26 = vor.u32 %v496_v9, %v495_v14  ;;  %v3164_v50 = vshrl.u32 %v2115_v46, 30  ;;  %vm501_vm0 = vcmp.lt.s32.totalorder %v3148_v29, 4  ;;  %vm1539_vm1 = vweird.f32 %v2753_v41 }
 0x128   : > { %v1529_v24 = vmul.f32 %v1528_v16, %v1524_v5  ;;  %v1536_v17 = vmul.f32 %v1535_v18, %v1524_v5  ;;  %v507_v48 = vsel %vm501_vm0, %v494_v33, 920167782  ;;  %v3170_v42 = vshll.u32 %v474_v62, 8 }
 0x129   : > { %vm1542_vm2 = vcmp.lt.s32.totalorder %v3119_v10, 2  ;;  %v2117_v19 = vshll.u32 %v3164_v50, 30  ;;  %vm499_vm3 = vcmp.lt.s32.totalorder %v3148_v29, 2  ;;  %v506_v53 = vsel %vm498_vm14, %v3150_v54, %v3155_v63 }
 0x12a   : > { %v1530_v31 = vadd.f32 1.0, %v1529_v24  ;;  %v1537_v34 = vadd.f32 1.0, %v1536_v17  ;;  %v508_v36 = vsel %vm500_vm15, %v491_v22, %v507_v48  ;;  %v511_v56 = vsel %vm501_vm0, %v497_v26, 1326507024 }
 0x12b   : > { %v2118_v5 = vsub.s32 %v2114_v8, %v2117_v19  ;;  %v510_v52 = vsel %vm498_vm14, %v3155_v63, %v491_v22  ;;  %vm1546_vm4 = vcmp.eq.s32.totalorder %v3119_v10, 2  ;;  %v512_v6 = vsel %vm500_vm15, %v494_v33, %v511_v56 }
 0x12c   : > { %v1538_v61 = vmul.f32 %v1537_v34, %v1522_v30  ;;  %v1547_v27 = vxor.u32 2147483648, %v1530_v31  ;;  %v515_v35 = vand.u32 65535, %v3170_v42  ;;  %v516_v3 = vshrl.u32 %v3170_v42, 16 }
 0x12d   : > { %vm2119_vm5 = vcmp.lt.s32.totalorder %v2118_v5, 0  ;;  %v2120_v58 = vsub.s32 0, %v2118_v5  ;;  %v509_v30 = vsel %vm499_vm3, %v506_v53, %v508_v36  ;;  %vm1543_vm6 = vcmp.eq.s32.totalorder %v3119_v10, 0 }
 0x12e   : > { %v1544_v62 = vxor.u32 2147483648, %v1538_v61  ;;  %v1548_v32 = vsel %vm1546_vm4, %v1547_v27, %v1538_v61  ;;  %v482_v39 = vshrl.u32 %v2621_v43, %v3133_v4  ;;  %v513_v2 = vsel %vm499_vm3, %v510_v52, %v512_v6  ;;  %v284_v52 = vpop.f32.mrf.mxu1 }
 0x12f   : > { %v2121_v28 = vsel %vm2119_vm5, %v2120_v58, %v2118_v5  ;;  %v517_v12 = vand.u32 65535, %v513_v2  ;;  %v518_v21 = vshrl.u32 %v513_v2, 16  ;;  %v539_v1 = vand.u32 65535, %v509_v30 }
 0x130   : > { %v1545_v38 = vsel %vm1543_vm6, %v1530_v31, %v1544_v62  ;;  %v2122_v20 = vclz %v2121_v28  ;;  %v540_v59 = vshrl.u32 %v509_v30, 16  ;;  %v2110_v4 = vadd.s32 %v3138_v55, %v3136_v44  ;;  %v3222_v28 = vld [vmem:[%s4222_s2] ss:$0 sm:$0xff] }
 0x131   : > { %v1549_v7 = vsel %vm1542_vm2, %v1545_v38, %v1548_v32  ;;  %v519_v11 = vmul.u32 %v517_v12, %v515_v35  ;;  %v520_v8 = vmul.u32 %v518_v21, %v515_v35  ;;  %v521_v57 = vmul.u32 %v517_v12, %v516_v3 }
 0x132   : > { %v1550_v25 = vsel %vm1539_vm1, nan, %v1549_v7  ;;  %v2476_v13 = vadd.s32 4294967294, %v2122_v20  ;;  %v502_v14 = vsel %vm498_vm14, %v482_v39, %v3150_v54  ;;  %v503_v10 = vsel %vm501_vm0, %v491_v22, 2102212464 }
 0x133   : > { %2333 = vst [vmem:[%s3035_s11 + $0x38] sm:$0xff] %v1550_v25  ;;  %v523_v9 = vshll.u32 %v520_v8, 16  ;;  %v525_v16 = vshll.u32 %v521_v57, 16  ;;  %v541_v41 = vmul.u32 %v539_v1, %v515_v35  ;;  %v542_v18 = vmul.u32 %v540_v59, %v515_v35 }
 0x134   : > { %vm2477_vm7 = vcmp.lt.s32.totalorder %v2476_v13, 0  ;;  %v543_v46 = vmul.u32 %v539_v1, %v516_v3  ;;  %v522_v26 = vmul.u32 %v518_v21, %v516_v3  ;;  %vm2018_vm9 = vcmp.lt.s32.totalorder %v2965_v23, 0 }
 0x135   : > { %v2125_v33 = vsel %vm2477_vm7, 0, %v2476_v13  ;;  %vm527_vm8 = vc.u32 %v519_v11, %v523_v9  ;;  %v529_v24 = vadd.s32 %v523_v9, %v519_v11  ;;  %v524_v17 = vshrl.u32 %v520_v8, 16 }
 0x136   : > { %v2126_v44 = vsub.s32 32, %v2125_v33  ;;  %v2130_v55 = vsub.s32 4294967266, %v2125_v33  ;;  %v528_v54 = vsel %vm527_vm8, 1, %v2627_v0  ;;  %v2127_v48 = vshll.u32 %v2118_v5, %v2125_v33  ;;  %v296_v5 = vpop.f32.mrf.mxu2 }
 0x137   : > { %v530_v31 = vadd.s32 %v528_v54, %v522_v26  ;;  %vm531_vm11 = vc.u32 %v529_v24, %v525_v16  ;;  %v545_v22 = vshll.u32 %v542_v18, 16  ;;  %v547_v36 = vshll.u32 %v543_v46, 16 }
 0x138   : > { %v2128_v34 = vshrl.u32 %v2110_v4, %v2126_v44  ;;  %v2131_v19 = vadd.s32 127, %v2130_v55  ;;  %v532_v53 = vsel %vm531_vm11, 1, %v2627_v0  ;;  %v544_v61 = vmul.u32 %v540_v59, %v516_v3 }
 0x139   : > { %v534_v56 = vadd.s32 %v532_v53, %v530_v31  ;;  %vm549_vm10 = vc.u32 %v541_v41, %v545_v22  ;;  %v551_v27 = vadd.s32 %v545_v22, %v541_v41  ;;  %v2140_v62 = vsub.s32 4, %v3164_v50 }
 0x13a   : > { %v2129_v6 = vor.u32 %v2128_v34, %v2127_v48  ;;  %v2132_v35 = vshll.u32 %v2131_v19, 23  ;;  %v550_v58 = vsel %vm549_vm10, 1, %v2627_v0  ;;  %v504_v30 = vsel %vm500_vm15, %v3155_v63, %v503_v10 }
 0x13b   : > { %v535_v32 = vadd.s32 %v534_v56, %v524_v17  ;;  %v552_v39 = vadd.s32 %v550_v58, %v544_v61  ;;  %vm553_vm13 = vc.u32 %v551_v27, %v547_v36  ;;  %v526_v38 = vshrl.u32 %v521_v57, 16 }
 0x13c   : > { %v2133_v2 = vor.u32 4788187, %v2132_v35  ;;  %v554_v3 = vsel %vm553_vm13, 1, %v2627_v0  ;;  %v3225_v12 = vadd.f32 %v3222_v28, %v284_v52  ;;  %v2136_v21 = vcvt.s32.f32 %v2129_v6 }
 0x13d   : > { %v546_v7 = vshrl.u32 %v542_v18, 16  ;;  %v556_v20 = vadd.s32 %v554_v3, %v552_v39  ;;  %v3228_v63 = vadd.f32 %v3222_v28, %v296_v5  ;;  %v536_v59 = vadd.s32 %v535_v32, %v526_v38 }
 0x13e   : > { %v2134_v1 = vand.u32 2147483647, %v2133_v2  ;;  %v931_v25 = vand.u32 2147483647, %v3225_v12  ;;  %v934_v11 = vand.u32 2139095040, %v3225_v12  ;;  %v2141_v8 = vsel %vm2018_vm9, %v2140_v62, %v3164_v50 }
 0x13f   : > { %v548_v57 = vshrl.u32 %v543_v46, 16  ;;  %v557_v4 = vadd.s32 %v556_v20, %v546_v7  ;;  %v555_v10 = vadd.s32 %v551_v27, %v547_v36  ;;  %vm2017_vm12 = vcmp.le.f32.partialorder %v2016_v37, 0.7853982 }
 0x140   : > { %v2137_v13 = vmul.f32 %v2136_v21, %v2134_v1  ;;  %v935_v9 = vshrl.u32 %v934_v11, 23  ;;  %v938_v16 = vand.u32 8388607, %v931_v25  ;;  %v505_v41 = vsel %vm499_vm3, %v502_v14, %v504_v30 }
 0x141   : > { %v558_v18 = vadd.s32 %v557_v4, %v548_v57  ;;  %v1554_v33 = vand.u32 2139095040, %v3228_v63  ;;  %v2143_v24 = vsel %vm2017_vm12, 0, %v2141_v8  ;;  %vm561_vm14 = vc.u32 %v536_v59, %v555_v10 }
 0x142   : > { %v2138_v26 = vxor.u32 2147483648, %v2137_v13  ;;  %v2454_v50 = vadd.s32 4294967169, %v935_v9  ;;  %v939_v44 = vor.u32 8388608, %v938_v16  ;;  %v559_v17 = vmul.u32 %v3170_v42, %v505_v41 }
 0x143   : > { %v562_v46 = vadd.s32 1, %v558_v18  ;;  %v2160_v48 = vadd.s32 3, %v2143_v24  ;;  %v1555_v14 = vshrl.u32 %v1554_v33, 23  ;;  %v3250_v62 = vadd.s32 %v555_v10, %v536_v59 }
 0x144   : > { %v2139_v55 = vsel %vm2018_vm9, %v2138_v26, %v2137_v13  ;;  %v941_v54 = vadd.s32 1, %v2454_v50  ;;  %v3246_v19 = vshll.u32 %v939_v44, 8  ;;  %v1551_v30 = vand.u32 2147483647, %v3228_v63 }
 0x145   : > { %v2142_v37 = vsel %vm2017_vm12, %v2965_v23, %v2139_v55  ;;  %v563_v29 = vsel %vm561_vm14, %v562_v46, %v558_v18  ;;  %v3248_v61 = vand.u32 3, %v2160_v48  ;;  %v2466_v52 = vadd.s32 4294967169, %v1555_v14 }
 0x146   : > { %v2144_v31 = vmul.f32 %v2142_v37, %v2142_v37  ;;  %v564_v22 = vadd.s32 %v563_v29, %v559_v17  ;;  %vm942_vm15 = vcmp.gt.s32.totalorder %v941_v54, 0  ;;  %v3253_v5 = vand.u32 65535, %v3246_v19 }
 0x147   : > { %v943_v34 = vsel %vm942_vm15, %v941_v54, 0  ;;  %vm468_vm0 = vcmp.lt.s32.totalorder %v3042_v40, 0  ;;  %v3258_v38 = vshrl.u32 %v3246_v19, 16  ;;  %vm2166_vm1 = vcmp.eq.s32.totalorder %v3248_v61, 2 }
 0x148   : > { %v2145_v53 = vmul.f32 -0.001358992, %v2144_v31  ;;  %v2152_v36 = vmul.f32 -0.00019511016, %v2144_v31  ;;  %v565_v56 = vadd.s32 536870912, %v564_v22  ;;  %v945_v27 = vand.u32 31, %v943_v34 }
 0x149   : > { %v3261_v3 = vshrl.u32 %v943_v34, 5  ;;  %v3265_v20 = vadd.s32 1, %v2466_v52  ;;  %vm2163_vm2 = vcmp.eq.s32.totalorder %v3248_v61, 0  ;;  %vm2162_vm3 = vcmp.lt.s32.totalorder %v3248_v61, 2 }
 0x14a   : > { %v2146_v42 = vadd.f32 0.041655596, %v2145_v53  ;;  %v2153_v6 = vadd.f32 0.008332121, %v2152_v36  ;;  %v566_v35 = vshrl.u32 %v565_v56, 30  ;;  %v946_v58 = vsub.s32 32, %v945_v27 }
 0x14b   : > { %v948_v21 = vshll.u32 %v2621_v43, %v945_v27  ;;  %v951_v8 = vshll.u32 %v2622_v45, %v945_v27  ;;  %v954_v13 = vshll.u32 %v2623_v47, %v945_v27  ;;  %vm2159_vm5 = vweird.f32 %v2965_v23 }
 0x14c   : > { %v2147_v32 = vmul.f32 %v2146_v42, %v2144_v31  ;;  %v2154_v39 = vmul.f32 %v2153_v6, %v2144_v31  ;;  %v567_v2 = vshll.u32 %v566_v35, 30  ;;  %v949_v7 = vshrl.u32 %v2622_v45, %v946_v58 }
 0x14d   : > { %v590_v57 = vsub.s32 4, %v566_v35  ;;  %v952_v4 = vshrl.u32 %v2623_v47, %v946_v58  ;;  %v955_v10 = vshrl.u32 %v2624_v49, %v946_v58  ;;  %v957_v33 = vshll.u32 %v2624_v49, %v945_v27 }
 0x14e   : > { %v2148_v1 = vadd.f32 -0.4999988, %v2147_v32  ;;  %v2155_v59 = vadd.f32 -0.16666654, %v2154_v39  ;;  %v3267_v11 = vsub.s32 %v564_v22, %v567_v2  ;;  %v950_v18 = vor.u32 %v949_v7, %v948_v21 }
 0x14f   : > { %v958_v26 = vshrl.u32 %v2625_v51, %v946_v58  ;;  %v960_v24 = vshll.u32 %v2625_v51, %v945_v27  ;;  %v961_v55 = vshrl.u32 %v2626_v60, %v946_v58  ;;  %vm3285_vm6 = vcmp.le.f32.partialorder %v466_v15, 0.7853982 }
 0x150   : > { %v2149_v9 = vmul.f32 %v2148_v1, %v2144_v31  ;;  %v2156_v16 = vmul.f32 %v2155_v59, %v2144_v31  ;;  %vm569_vm4 = vcmp.lt.s32.totalorder %v3267_v11, 0  ;;  %v570_v41 = vsub.s32 0, %v3267_v11 }
 0x151   : > { %v953_v48 = vor.u32 %v952_v4, %v951_v8  ;;  %v956_v29 = vor.u32 %v955_v10, %v954_v13  ;;  %v959_v14 = vor.u32 %v958_v26, %v957_v33  ;;  %v947_v34 = vshrl.u32 %v2621_v43, %v946_v58 }
 0x152   : > { %v2150_v50 = vadd.f32 1.0, %v2149_v9  ;;  %v2157_v46 = vadd.f32 1.0, %v2156_v16  ;;  %v571_v44 = vsel %vm569_vm4, %v570_v41, %v3267_v11  ;;  %vm963_vm7 = vcmp.lt.s32.totalorder %v3261_v3, 1 }
 0x153   : > { %v572_v54 = vclz %v571_v44  ;;  %v591_v36 = vsel %vm468_vm0, %v590_v57, %v566_v35  ;;  %vm964_vm8 = vcmp.lt.s32.totalorder %v3261_v3, 2  ;;  %vm965_vm9 = vcmp.lt.s32.totalorder %v3261_v3, 3 }
 0x154   : > { %v2158_v31 = vmul.f32 %v2157_v46, %v2142_v37  ;;  %v2167_v22 = vxor.u32 2147483648, %v2150_v50  ;;  %v962_v27 = vor.u32 %v961_v55, %v960_v24  ;;  %vm966_vm11 = vcmp.lt.s32.totalorder %v3261_v3, 4 }
 0x155   : > { %v2446_v53 = vadd.s32 4294967294, %v572_v54  ;;  %v968_v37 = vsel %vm966_vm11, %v956_v29, 2102212464  ;;  %v971_v52 = vsel %vm963_vm7, %v950_v18, %v953_v48  ;;  %v972_v42 = vsel %vm966_vm11, %v959_v14, 920167782 }
 0x156   : > { %v2164_v15 = vxor.u32 2147483648, %v2158_v31  ;;  %v2168_v56 = vsel %vm2166_vm1, %v2167_v22, %v2158_v31  ;;  %v967_v58 = vsel %vm963_vm7, %v947_v34, %v950_v18  ;;  %v973_v32 = vsel %vm965_vm9, %v956_v29, %v972_v42 }
 0x157   : > { %vm2447_vm10 = vcmp.lt.s32.totalorder %v2446_v53, 0  ;;  %v969_v7 = vsel %vm965_vm9, %v953_v48, %v968_v37  ;;  %v974_v8 = vsel %vm964_vm8, %v971_v52, %v973_v32  ;;  %v975_v57 = vsel %vm963_vm7, %v953_v48, %v956_v29 }
 0x158   : > { %v2165_v6 = vsel %vm2163_vm2, %v2150_v50, %v2164_v15  ;;  %v575_v35 = vsel %vm2447_vm10, 0, %v2446_v53  ;;  %v976_v13 = vsel %vm966_vm11, %v962_v27, 1326507024  ;;  %v1004_v10 = vand.u32 65535, %v974_v8 }
 0x159   : > { %v2169_v39 = vsel %vm2162_vm3, %v2165_v6, %v2168_v56  ;;  %v576_v2 = vsub.s32 32, %v575_v35  ;;  %v580_v21 = vsub.s32 4294967266, %v575_v35  ;;  %v577_v59 = vshll.u32 %v3267_v11, %v575_v35 }
 0x15a   : > { %v2170_v1 = vsel %vm2159_vm5, nan, %v2169_v39  ;;  %v593_v23 = vsel %vm3285_vm6, 0, %v591_v36  ;;  %v3329_v11 = vsel %vm964_vm8, %v967_v58, %v969_v7  ;;  %v977_v9 = vsel %vm965_vm9, %v959_v14, %v976_v13 }
 0x15b   : > { %2337 = vst [vmem:[%s3035_s11 + $0x58] sm:$0xff] %v2170_v1  ;;  %v578_v61 = vshrl.u32 %v3250_v62, %v576_v2  ;;  %v581_v4 = vadd.s32 127, %v580_v21  ;;  %v1005_v16 = vshrl.u32 %v974_v8, 16  ;;  %v978_v62 = vsel %vm964_vm8, %v975_v57, %v977_v9 }
 0x15c   : > { %vm1562_vm13 = vcmp.gt.s32.totalorder %v3265_v20, 0  ;;  %v982_v33 = vand.u32 65535, %v978_v62  ;;  %v983_v26 = vshrl.u32 %v978_v62, 16  ;;  %v1008_v50 = vmul.u32 %v1004_v10, %v3258_v38 }
 0x15d   : > { %v579_v41 = vor.u32 %v578_v61, %v577_v59  ;;  %v582_v18 = vshll.u32 %v581_v4, 23  ;;  %v1007_v24 = vmul.u32 %v1005_v16, %v3253_v5  ;;  %v3338_v44 = vadd.s32 3, %v593_v23 }
 0x15e   : > { %v1024_v55 = vmul.u32 %v3246_v19, %v3329_v11  ;;  %v3344_v54 = vand.u32 8388607, %v1551_v30  ;;  %v985_v3 = vmul.u32 %v983_v26, %v3253_v5  ;;  %v986_v48 = vmul.u32 %v982_v33, %v3258_v38 }
 0x15f   : > { %v583_v46 = vor.u32 4788187, %v582_v18  ;;  %v1006_v29 = vmul.u32 %v1004_v10, %v3253_v5  ;;  %v1563_v14 = vsel %vm1562_vm13, %v3265_v20, 0  ;;  %v586_v22 = vcvt.s32.f32 %v579_v41 }
 0x160   : > { %v1009_v34 = vmul.u32 %v1005_v16, %v3258_v38  ;;  %v1010_v53 = vshll.u32 %v1007_v24, 16  ;;  %v984_v36 = vmul.u32 %v982_v33, %v3253_v5  ;;  %v987_v15 = vmul.u32 %v983_v26, %v3258_v38 }
 0x161   : > { %v584_v31 = vand.u32 2147483647, %v583_v46  ;;  %v988_v56 = vshll.u32 %v985_v3, 16  ;;  %v1012_v27 = vshll.u32 %v1008_v50, 16  ;;  %v990_v52 = vshll.u32 %v986_v48, 16 }
 0x162   : > { %vm1014_vm12 = vc.u32 %v1006_v29, %v1010_v53  ;;  %v1016_v42 = vadd.s32 %v1010_v53, %v1006_v29  ;;  %v1565_v20 = vand.u32 31, %v1563_v14  ;;  %v1011_v5 = vshrl.u32 %v1007_v24, 16 }
 0x163   : > { %v587_v37 = vmul.f32 %v586_v22, %v584_v31  ;;  %vm992_vm14 = vc.u32 %v984_v36, %v988_v56  ;;  %v994_v6 = vadd.s32 %v988_v56, %v984_v36  ;;  %v1015_v35 = vsel %vm1014_vm12, 1, %v2627_v0 }
 0x164   : > { %v993_v32 = vsel %vm992_vm14, 1, %v2627_v0  ;;  %v1017_v39 = vadd.s32 %v1015_v35, %v1009_v34  ;;  %vm1018_vm15 = vc.u32 %v1016_v42, %v1012_v27  ;;  %v3359_v59 = vsub.s32 32, %v1565_v20 }
 0x165   : > { %v588_v58 = vxor.u32 2147483648, %v587_v37  ;;  %v995_v2 = vadd.s32 %v993_v32, %v987_v15  ;;  %vm996_vm1 = vc.u32 %v994_v6, %v990_v52  ;;  %v1019_v38 = vsel %vm1018_vm15, 1, %v2627_v0 }
 0x166   : > { %v997_v7 = vsel %vm996_vm1, 1, %v2627_v0  ;;  %v1021_v1 = vadd.s32 %v1019_v38, %v1017_v39  ;;  %v989_v57 = vshrl.u32 %v985_v3, 16  ;;  %v3364_v4 = vshrl.u32 %v1563_v14, 5 }
 0x167   : > { %v589_v21 = vsel %vm468_vm0, %v588_v58, %v587_v37  ;;  %v999_v61 = vadd.s32 %v997_v7, %v995_v2  ;;  %v991_v10 = vshrl.u32 %v986_v48, 16  ;;  %v1013_v23 = vshrl.u32 %v1008_v50, 16 }
 0x168   : > { %v592_v8 = vsel %vm3285_vm6, %v3042_v40, %v589_v21  ;;  %v1022_v9 = vadd.s32 %v1021_v1, %v1011_v5  ;;  %v3366_v41 = vadd.s32 %v1016_v42, %v1012_v27  ;;  %v1568_v18 = vshll.u32 %v2621_v43, %v1565_v20 }
 0x169   : > { %v594_v13 = vmul.f32 %v592_v8, %v592_v8  ;;  %v1000_v16 = vadd.s32 %v999_v61, %v989_v57  ;;  %v1571_v62 = vshll.u32 %v2622_v45, %v1565_v20  ;;  %v1569_v17 = vshrl.u32 %v2622_v45, %v3359_v59 }
 0x16a   : > { %v1023_v24 = vadd.s32 %v1022_v9, %v1013_v23  ;;  %v1572_v3 = vshrl.u32 %v2623_v47, %v3359_v59  ;;  %v1575_v50 = vshrl.u32 %v2624_v49, %v3359_v59  ;;  %v1577_v48 = vshll.u32 %v2624_v49, %v1565_v20 }
 0x16b   : > { %v595_v33 = vmul.f32 -0.001358992, %v594_v13  ;;  %v602_v26 = vmul.f32 -0.00019511016, %v594_v13  ;;  %v3372_v46 = vadd.s32 %v1000_v16, %v991_v10  ;;  %v1578_v22 = vshrl.u32 %v2625_v51, %v3359_v59 }
 0x16c   : > { %v1027_v31 = vadd.s32 1, %v1023_v24  ;;  %v1574_v34 = vshll.u32 %v2623_v47, %v1565_v20  ;;  %v1580_v53 = vshll.u32 %v2625_v51, %v1565_v20  ;;  %v1581_v36 = vshrl.u32 %v2626_v60, %v3359_v59 }
 0x16d   : > { %v596_v29 = vadd.f32 0.041655596, %v595_v33  ;;  %v603_v14 = vadd.f32 0.008332121, %v602_v26  ;;  %vm1026_vm0 = vc.u32 %v3372_v46, %v3366_v41  ;;  %v1579_v37 = vor.u32 %v1578_v22, %v1577_v48 }
 0x16e   : > { %v1028_v27 = vsel %vm1026_vm0, %v1027_v31, %v1023_v24  ;;  %v3390_v42 = vor.u32 %v1569_v17, %v1568_v18  ;;  %v3392_v6 = vor.u32 %v1572_v3, %v1571_v62  ;;  %v3394_v35 = vor.u32 %v1575_v50, %v1574_v34 }
 0x16f   : > { %v597_v15 = vmul.f32 %v596_v29, %v594_v13  ;;  %v604_v56 = vmul.f32 %v603_v14, %v594_v13  ;;  %v1029_v52 = vadd.s32 %v1028_v27, %v1024_v55  ;;  %v1582_v20 = vor.u32 %v1581_v36, %v1580_v53 }
 0x170   : > { %v611_v39 = vand.u32 3, %v3338_v44  ;;  %v1559_v5 = vor.u32 8388608, %v3344_v54  ;;  %vm1586_vm2 = vcmp.lt.s32.totalorder %v3364_v4, 4  ;;  %vm1583_vm3 = vcmp.lt.s32.totalorder %v3364_v4, 1 }
 0x171   : > { %v598_v58 = vadd.f32 -0.4999988, %v597_v15  ;;  %v605_v32 = vadd.f32 -0.16666654, %v604_v56  ;;  %v1030_v2 = vadd.s32 536870912, %v1029_v52  ;;  %vm1585_vm4 = vcmp.lt.s32.totalorder %v3364_v4, 3 }
 0x172   : > { %v1592_v19 = vsel %vm1586_vm2, %v1579_v37, 920167782  ;;  %v1591_v44 = vsel %vm1583_vm3, %v3390_v42, %v3392_v6  ;;  %v1595_v55 = vsel %vm1583_vm3, %v3392_v6, %v3394_v35  ;;  %v1596_v57 = vsel %vm1586_vm2, %v1582_v20, 1326507024 }
 0x173   : > { %v599_v38 = vmul.f32 %v598_v58, %v594_v13  ;;  %v606_v21 = vmul.f32 %v605_v32, %v594_v13  ;;  %v3402_v11 = vshrl.u32 %v1030_v2, 30  ;;  %v1593_v1 = vsel %vm1585_vm4, %v3394_v35, %v1592_v19 }
 0x174   : > { %vm1584_vm5 = vcmp.lt.s32.totalorder %v3364_v4, 2  ;;  %v1597_v13 = vsel %vm1585_vm4, %v1579_v37, %v1596_v57  ;;  %v3422_v10 = vshll.u32 %v1559_v5, 8  ;;  %vm609_vm6 = vweird.f32 %v3042_v40 }
 0x175   : > { %v600_v54 = vadd.f32 1.0, %v599_v38  ;;  %v607_v7 = vadd.f32 1.0, %v606_v21  ;;  %v1032_v61 = vshll.u32 %v3402_v11, 30  ;;  %v1598_v16 = vsel %vm1584_vm5, %v1595_v55, %v1597_v13 }
 0x176   : > { %vm612_vm7 = vcmp.lt.s32.totalorder %v611_v39, 2  ;;  %vm613_vm8 = vcmp.eq.s32.totalorder %v611_v39, 0  ;;  %v1594_v62 = vsel %vm1584_vm5, %v1591_v44, %v1593_v1  ;;  %vm616_vm9 = vcmp.eq.s32.totalorder %v611_v39, 2  ;;  %v308_v1 = vpop.f32.mrf.mxu3 }
 0x177   : > { %v608_v23 = vmul.f32 %v607_v7, %v592_v8  ;;  %v617_v9 = vxor.u32 2147483648, %v600_v54  ;;  %v1033_v18 = vsub.s32 %v1029_v52, %v1032_v61  ;;  %v1601_v26 = vshrl.u32 %v3422_v10, 16 }
 0x178   : > { %v1602_v24 = vand.u32 65535, %v1598_v16  ;;  %v1600_v17 = vand.u32 65535, %v3422_v10  ;;  %v1603_v3 = vshrl.u32 %v1598_v16, 16  ;;  %v1624_v14 = vand.u32 65535, %v1594_v62 }
 0x179   : > { %v614_v33 = vxor.u32 2147483648, %v608_v23  ;;  %vm1034_vm11 = vcmp.lt.s32.totalorder %v1033_v18, 0  ;;  %v1035_v8 = vsub.s32 0, %v1033_v18  ;;  %v618_v48 = vsel %vm616_vm9, %v617_v9, %v608_v23 }
 0x17a   : > { %v1606_v29 = vmul.u32 %v1602_v24, %v1601_v26  ;;  %v1605_v34 = vmul.u32 %v1603_v3, %v1600_v17  ;;  %v1625_v53 = vshrl.u32 %v1594_v62, 16  ;;  %v1604_v56 = vmul.u32 %v1602_v24, %v1600_v17 }
 0x17b   : > { %v615_v50 = vsel %vm613_vm8, %v600_v54, %v614_v33  ;;  %v1036_v22 = vsel %vm1034_vm11, %v1035_v8, %v1033_v18  ;;  %v1567_v52 = vshrl.u32 %v2621_v43, %v3359_v59  ;;  %v1607_v58 = vmul.u32 %v1603_v3, %v1601_v26 }
 0x17c   : > { %v619_v31 = vsel %vm612_vm7, %v615_v50, %v618_v48  ;;  %v1037_v15 = vclz %v1036_v22  ;;  %v1608_v27 = vshll.u32 %v1605_v34, 16  ;;  %v1610_v32 = vshll.u32 %v1606_v29, 16 }
 0x17d   : > { %v620_v36 = vsel %vm609_vm6, nan, %v619_v31  ;;  %v1627_v39 = vmul.u32 %v1625_v53, %v1600_v17  ;;  %v1628_v2 = vmul.u32 %v1624_v14, %v1601_v26  ;;  %v1025_v5 = vadd.s32 %v3366_v41, %v3372_v46 }
 0x17e   : > { %2327 = vst [vmem:[%s3035_s11 + $0x8] sm:$0xff] %v620_v36  ;;  %v2455_v37 = vadd.s32 4294967294, %v1037_v15  ;;  %vm1612_vm10 = vc.u32 %v1604_v56, %v1608_v27  ;;  %v1614_v20 = vadd.s32 %v1608_v27, %v1604_v56  ;;  %v1609_v40 = vshrl.u32 %v1605_v34, 16 }
 0x17f   : > { %v1613_v38 = vsel %vm1612_vm10, 1, %v2627_v0  ;;  %v1630_v44 = vshll.u32 %v1627_v39, 16  ;;  %v1626_v7 = vmul.u32 %v1624_v14, %v1600_v17  ;;  %v1629_v13 = vmul.u32 %v1625_v53, %v1601_v26 }
 0x180   : > { %vm2456_vm13 = vcmp.lt.s32.totalorder %v2455_v37, 0  ;;  %v1615_v19 = vadd.s32 %v1613_v38, %v1607_v58  ;;  %vm1616_vm12 = vc.u32 %v1614_v20, %v1610_v32  ;;  %v1632_v23 = vshll.u32 %v1628_v2, 16 }
 0x181   : > { %v1040_v21 = vsel %vm2456_vm13, 0, %v2455_v37  ;;  %v1617_v59 = vsel %vm1616_vm12, 1, %v2627_v0  ;;  %vm1634_vm14 = vc.u32 %v1626_v7, %v1630_v44  ;;  %v1636_v46 = vadd.s32 %v1630_v44, %v1626_v7 }
 0x182   : > { %v1041_v55 = vsub.s32 32, %v1040_v21  ;;  %v1045_v54 = vsub.s32 4294967266, %v1040_v21  ;;  %v1042_v57 = vshll.u32 %v1033_v18, %v1040_v21  ;;  %v1619_v61 = vadd.s32 %v1617_v59, %v1615_v19 }
 0x183   : > { %v1588_v16 = vsel %vm1586_vm2, %v3394_v35, 2102212464  ;;  %v1635_v33 = vsel %vm1634_vm14, 1, %v2627_v0  ;;  %v3446_v24 = vadd.f32 %v3222_v28, %v308_v1  ;;  %vm1638_vm15 = vc.u32 %v1636_v46, %v1632_v23 }
 0x184   : > { %v1043_v9 = vshrl.u32 %v1025_v5, %v1041_v55  ;;  %v1046_v41 = vadd.s32 127, %v1045_v54  ;;  %v1620_v62 = vadd.s32 %v1619_v61, %v1609_v40  ;;  %v1637_v18 = vadd.s32 %v1635_v33, %v1629_v13 }
 0x185   : > { %v1055_v26 = vsub.s32 4, %v3402_v11  ;;  %v1611_v3 = vshrl.u32 %v1606_v29, 16  ;;  %v1639_v50 = vsel %vm1638_vm15, 1, %v2627_v0  ;;  %v2171_v48 = vand.u32 2147483647, %v3446_v24 }
 0x186   : > { %v1044_v8 = vor.u32 %v1043_v9, %v1042_v57  ;;  %v1047_v17 = vshll.u32 %v1046_v41, 23  ;;  %vm933_vm1 = vcmp.lt.s32.totalorder %v3225_v12, 0  ;;  %v1631_v14 = vshrl.u32 %v1627_v39, 16 }
 0x187   : > { %v1641_v31 = vadd.s32 %v1639_v50, %v1637_v18  ;;  %v1587_v22 = vsel %vm1583_vm3, %v1567_v52, %v3390_v42  ;;  %v1589_v34 = vsel %vm1585_vm4, %v3392_v6, %v1588_v16  ;;  %v1621_v53 = vadd.s32 %v1620_v62, %v1611_v3  ;;  %v278_v52 = vpop.f32.mrf.mxu0 }
 0x188   : > { %v1048_v35 = vor.u32 4788187, %v1047_v17  ;;  %v2174_v29 = vand.u32 2139095040, %v3446_v24  ;;  %v1051_v15 = vcvt.s32.f32 %v1044_v8  ;;  %v1633_v56 = vshrl.u32 %v1628_v2, 16 }
 0x189   : > { %v1642_v27 = vadd.s32 %v1641_v31, %v1631_v14  ;;  %v1056_v37 = vsel %vm933_vm1, %v1055_v26, %v3402_v11  ;;  %v1640_v58 = vadd.s32 %v1636_v46, %v1632_v23  ;;  %v2178_v42 = vand.u32 8388607, %v2171_v48 }
 0x18a   : > { %v1049_v36 = vand.u32 2147483647, %v1048_v35  ;;  %v2175_v32 = vshrl.u32 %v2174_v29, 23  ;;  %v1590_v6 = vsel %vm1584_vm5, %v1587_v22, %v1589_v34  ;;  %vm932_vm0 = vcmp.le.f32.partialorder %v931_v25, 0.7853982 }
 0x18b   : > { %v1643_v39 = vadd.s32 %v1642_v27, %v1633_v56  ;;  %vm1646_vm2 = vc.u32 %v1621_v53, %v1640_v58  ;;  %v1058_v40 = vsel %vm932_vm0, 0, %v1056_v37  ;;  %v3469_v11 = vadd.f32 %v3222_v28, %v278_v52 }
 0x18c   : > { %v1052_v20 = vmul.f32 %v1051_v15, %v1049_v36  ;;  %v2478_v2 = vadd.s32 4294967169, %v2175_v32  ;;  %v1644_v21 = vmul.u32 %v3422_v10, %v1590_v6  ;;  %v2179_v19 = vor.u32 8388608, %v2178_v42 }
 0x18d   : > { %v1647_v38 = vadd.s32 1, %v1643_v39  ;;  %v1075_v59 = vadd.s32 3, %v1058_v40  ;;  %v624_v57 = vand.u32 2139095040, %v3469_v11  ;;  %v621_v10 = vand.u32 2147483647, %v3469_v11 }
 0x18e   : > { %v1053_v5 = vxor.u32 2147483648, %v1052_v20  ;;  %v2181_v44 = vadd.s32 1, %v2478_v2  ;;  %v3476_v13 = vshll.u32 %v2179_v19, 8  ;;  %v3481_v8 = vadd.s32 %v1640_v58, %v1621_v53 }
 0x18f   : > { %v1648_v55 = vsel %vm1646_vm2, %v1647_v38, %v1643_v39  ;;  %v3479_v41 = vand.u32 3, %v1075_v59  ;;  %v625_v17 = vshrl.u32 %v624_v57, 23  ;;  %v3491_v50 = vand.u32 8388607, %v621_v10 }
 0x190   : > { %v1054_v4 = vsel %vm933_vm1, %v1053_v5, %v1052_v20  ;;  %v1649_v25 = vadd.s32 %v1648_v55, %v1644_v21  ;;  %vm2182_vm3 = vcmp.gt.s32.totalorder %v2181_v44, 0  ;;  %v3484_v26 = vand.u32 65535, %v3476_v13 }
 0x191   : > { %v1057_v54 = vsel %vm932_vm0, %v3225_v12, %v1054_v4  ;;  %v2183_v1 = vsel %vm2182_vm3, %v2181_v44, 0  ;;  %v3487_v3 = vshrl.u32 %v3476_v13, 16  ;;  %vm1553_vm4 = vcmp.lt.s32.totalorder %v3228_v63, 0 }
 0x192   : > { %v1059_v7 = vmul.f32 %v1057_v54, %v1057_v54  ;;  %v1650_v61 = vadd.s32 536870912, %v1649_v25  ;;  %v2185_v28 = vand.u32 31, %v2183_v1  ;;  %v3494_v31 = vshrl.u32 %v2183_v1, 5 }
 0x193   : > { %vm1078_vm5 = vcmp.eq.s32.totalorder %v3479_v41, 0  ;;  %vm1081_vm6 = vcmp.eq.s32.totalorder %v3479_v41, 2  ;;  %vm1077_vm8 = vcmp.lt.s32.totalorder %v3479_v41, 2  ;;  %v2448_v39 = vadd.s32 4294967169, %v625_v17 }
 0x194   : > { %v1060_v23 = vmul.f32 -0.001358992, %v1059_v7  ;;  %v1067_v9 = vmul.f32 -0.00019511016, %v1059_v7  ;;  %v1651_v46 = vshrl.u32 %v1650_v61, 30  ;;  %v2186_v16 = vsub.s32 32, %v2185_v28 }
 0x195   : > { %v2188_v22 = vshll.u32 %v2621_v43, %v2185_v28  ;;  %v2191_v29 = vshll.u32 %v2622_v45, %v2185_v28  ;;  %v2194_v36 = vshll.u32 %v2623_v47, %v2185_v28  ;;  %v2197_v37 = vshll.u32 %v2624_v49, %v2185_v28 }
 0x196   : > { %v1061_v62 = vadd.f32 0.041655596, %v1060_v23  ;;  %v1068_v33 = vadd.f32 0.008332121, %v1067_v9  ;;  %v1652_v18 = vshll.u32 %v1651_v46, 30  ;;  %v2189_v53 = vshrl.u32 %v2622_v45, %v2186_v16 }
 0x197   : > { %v2192_v27 = vshrl.u32 %v2623_v47, %v2186_v16  ;;  %v2195_v32 = vshrl.u32 %v2624_v49, %v2186_v16  ;;  %v2198_v42 = vshrl.u32 %v2625_v51, %v2186_v16  ;;  %v2200_v6 = vshll.u32 %v2625_v51, %v2185_v28 }
 0x198   : > { %v1062_v35 = vmul.f32 %v1061_v62, %v1059_v7  ;;  %v1069_v14 = vmul.f32 %v1068_v33, %v1059_v7  ;;  %v3497_v34 = vsub.s32 %v1649_v25, %v1652_v18  ;;  %vm1074_vm9 = vweird.f32 %v3225_v12 }
 0x199   : > { %v1675_v5 = vsub.s32 4, %v1651_v46  ;;  %v2190_v40 = vor.u32 %v2189_v53, %v2188_v22  ;;  %v2201_v38 = vshrl.u32 %v2626_v60, %v2186_v16  ;;  %v2193_v4 = vor.u32 %v2192_v27, %v2191_v29 }
 0x19a   : > { %v1063_v15 = vadd.f32 -0.4999988, %v1062_v35  ;;  %v1070_v56 = vadd.f32 -0.16666654, %v1069_v14  ;;  %vm1654_vm7 = vcmp.lt.s32.totalorder %v3497_v34, 0  ;;  %v1655_v58 = vsub.s32 0, %v3497_v34 }
 0x19b   : > { %v2196_v55 = vor.u32 %v2195_v32, %v2194_v36  ;;  %v2199_v59 = vor.u32 %v2198_v42, %v2197_v37  ;;  %v2202_v25 = vor.u32 %v2201_v38, %v2200_v6  ;;  %vm2203_vm11 = vcmp.lt.s32.totalorder %v3494_v31, 1 }
 0x19c   : > { %v1064_v52 = vmul.f32 %v1063_v15, %v1059_v7  ;;  %v1071_v20 = vmul.f32 %v1070_v56, %v1059_v7  ;;  %v1656_v2 = vsel %vm1654_vm7, %v1655_v58, %v3497_v34  ;;  %v3516_v61 = vadd.s32 1, %v2448_v39 }
 0x19d   : > { %v1657_v44 = vclz %v1656_v2  ;;  %v3520_v28 = vsel %vm1553_vm4, %v1675_v5, %v1651_v46  ;;  %v2187_v23 = vshrl.u32 %v2621_v43, %v2186_v16  ;;  %vm2204_vm10 = vcmp.lt.s32.totalorder %v3494_v31, 2 }
 0x19e   : > { %v1065_v21 = vadd.f32 1.0, %v1064_v52  ;;  %v1072_v19 = vadd.f32 1.0, %v1071_v20  ;;  %vm2206_vm13 = vcmp.lt.s32.totalorder %v3494_v31, 4  ;;  %vm3527_vm12 = vcmp.le.f32.partialorder %v1551_v30, 0.7853982 }
 0x19f   : > { %v2467_v57 = vadd.s32 4294967294, %v1657_v44  ;;  %vm2205_vm15 = vcmp.lt.s32.totalorder %v3494_v31, 3  ;;  %v2212_v16 = vsel %vm2206_vm13, %v2199_v59, 920167782  ;;  %v2215_v33 = vsel %vm2203_vm11, %v2193_v4, %v2196_v55 }
 0x1a0   : > { %v1073_v7 = vmul.f32 %v1072_v19, %v1057_v54  ;;  %v1082_v1 = vxor.u32 2147483648, %v1065_v21  ;;  %v2211_v54 = vsel %vm2203_vm11, %v2190_v40, %v2193_v4  ;;  %v2216_v30 = vsel %vm2206_vm13, %v2202_v25, 1326507024 }
 0x1a1   : > { %vm2468_vm14 = vcmp.lt.s32.totalorder %v2467_v57, 0  ;;  %v2213_v29 = vsel %vm2205_vm15, %v2196_v55, %v2212_v16  ;;  %v2217_v36 = vsel %vm2205_vm15, %v2199_v59, %v2216_v30  ;;  %v2208_v41 = vsel %vm2206_vm13, %v2196_v55, 2102212464 }
 0x1a2   : > { %v1079_v9 = vxor.u32 2147483648, %v1073_v7  ;;  %v1660_v46 = vsel %vm2468_vm14, 0, %v2467_v57  ;;  %v1083_v18 = vsel %vm1081_vm6, %v1082_v1, %v1073_v7  ;;  %v2214_v37 = vsel %vm2204_vm10, %v2211_v54, %v2213_v29 }
 0x1a3   : > { %v1661_v35 = vsub.s32 32, %v1660_v46  ;;  %v1665_v14 = vsub.s32 4294967266, %v1660_v46  ;;  %v1662_v53 = vshll.u32 %v3497_v34, %v1660_v46  ;;  %v2218_v34 = vsel %vm2204_vm10, %v2215_v33, %v2217_v36 }
 0x1a4   : > { %v1080_v17 = vsel %vm1078_vm5, %v1065_v21, %v1079_v9  ;;  %v2244_v58 = vand.u32 65535, %v2214_v37  ;;  %v2245_v32 = vshrl.u32 %v2214_v37, 16  ;;  %v2222_v20 = vand.u32 65535, %v2218_v34 }
 0x1a5   : > { %v1084_v22 = vsel %vm1077_vm8, %v1080_v17, %v1083_v18  ;;  %v1663_v56 = vshrl.u32 %v3481_v8, %v1661_v35  ;;  %v1666_v27 = vadd.s32 127, %v1665_v14  ;;  %v2223_v12 = vshrl.u32 %v2218_v34, 16 }
 0x1a6   : > { %v1085_v15 = vsel %vm1074_vm9, nan, %v1084_v22  ;;  %v2207_v8 = vsel %vm2203_vm11, %v2187_v23, %v2190_v40  ;;  %v2246_v6 = vmul.u32 %v2244_v58, %v3484_v26  ;;  %v2247_v39 = vmul.u32 %v2245_v32, %v3484_v26 }
 0x1a7   : > { %2330 = vst [vmem:[%s3035_s11 + $0x20] sm:$0xff] %v1085_v15  ;;  %v1664_v42 = vor.u32 %v1663_v56, %v1662_v53  ;;  %v1667_v52 = vshll.u32 %v1666_v27, 23  ;;  %v2248_v2 = vmul.u32 %v2244_v58, %v3487_v3  ;;  %v2209_v38 = vsel %vm2205_vm15, %v2193_v4, %v2208_v41 }
 0x1a8   : > { %v2224_v21 = vmul.u32 %v2222_v20, %v3484_v26  ;;  %v2225_v19 = vmul.u32 %v2223_v12, %v3484_v26  ;;  %v1678_v44 = vsel %vm3527_vm12, 0, %v3520_v28  ;;  %v2226_v40 = vmul.u32 %v2222_v20, %v3487_v3 }
 0x1a9   : > { %v1668_v5 = vor.u32 4788187, %v1667_v52  ;;  %v2249_v55 = vmul.u32 %v2245_v32, %v3487_v3  ;;  %v2250_v59 = vshll.u32 %v2247_v39, 16  ;;  %v1671_v7 = vcvt.s32.f32 %v1664_v42 }
 0x1aa   : > { %v2227_v1 = vmul.u32 %v2223_v12, %v3487_v3  ;;  %v2228_v57 = vshll.u32 %v2225_v19, 16  ;;  %v3578_v4 = vsel %vm2204_vm10, %v2207_v8, %v2209_v38  ;;  %v2230_v23 = vshll.u32 %v2226_v40, 16 }
 0x1ab   : > { %v1669_v25 = vand.u32 2147483647, %v1668_v5  ;;  %v2252_v26 = vshll.u32 %v2248_v2, 16  ;;  %vm2254_vm1 = vc.u32 %v2246_v6, %v2250_v59  ;;  %v2256_v16 = vadd.s32 %v2250_v59, %v2246_v6 }
 0x1ac   : > { %vm2232_vm0 = vc.u32 %v2224_v21, %v2228_v57  ;;  %v2234_v28 = vadd.s32 %v2228_v57, %v2224_v21  ;;  %v2255_v54 = vsel %vm2254_vm1, 1, %v2627_v0  ;;  %vm632_vm2 = vcmp.gt.s32.totalorder %v3516_v61, 0 }
 0x1ad   : > { %v1672_v9 = vmul.f32 %v1671_v7, %v1669_v25  ;;  %v2233_v46 = vsel %vm2232_vm0, 1, %v2627_v0  ;;  %v2257_v33 = vadd.s32 %v2255_v54, %v2249_v55  ;;  %v633_v31 = vsel %vm632_vm2, %v3516_v61, 0 }
 0x1ae   : > { %v2235_v30 = vadd.s32 %v2233_v46, %v2227_v1  ;;  %vm2236_vm3 = vc.u32 %v2234_v28, %v2230_v23  ;;  %v1695_v17 = vadd.s32 3, %v1678_v44  ;;  %v2229_v18 = vshrl.u32 %v2225_v19, 16 }
 0x1af   : > { %v1673_v3 = vxor.u32 2147483648, %v1672_v9  ;;  %v2237_v35 = vsel %vm2236_vm3, 1, %v2627_v0  ;;  %vm2258_vm5 = vc.u32 %v2256_v16, %v2252_v26  ;;  %v635_v29 = vand.u32 31, %v633_v31 }
 0x1b0   : > { %v2239_v22 = vadd.s32 %v2237_v35, %v2235_v30  ;;  %v2259_v53 = vsel %vm2258_vm5, 1, %v2627_v0  ;;  %v2251_v15 = vshrl.u32 %v2247_v39, 16  ;;  %v2264_v61 = vmul.u32 %v3476_v13, %v3578_v4 }
 0x1b1   : > { %v1674_v14 = vsel %vm1553_vm4, %v1673_v3, %v1672_v9  ;;  %v2261_v56 = vadd.s32 %v2259_v53, %v2257_v33  ;;  %v2231_v37 = vshrl.u32 %v2226_v40, 16  ;;  %v3593_v34 = vsub.s32 32, %v635_v29 }
 0x1b2   : > { %v1677_v36 = vsel %vm3527_vm12, %v3228_v63, %v1674_v14  ;;  %v2240_v41 = vadd.s32 %v2239_v22, %v2229_v18  ;;  %v2253_v58 = vshrl.u32 %v2248_v2, 16  ;;  %v3595_v32 = vadd.s32 %v2256_v16, %v2252_v26 }
 0x1b3   : > { %v1679_v27 = vmul.f32 %v1677_v36, %v1677_v36  ;;  %v2262_v42 = vadd.s32 %v2261_v56, %v2251_v15  ;;  %v641_v52 = vshll.u32 %v2622_v45, %v635_v29  ;;  %v3600_v8 = vshrl.u32 %v633_v31, 5 }
 0x1b4   : > { %v3598_v62 = vadd.s32 %v2240_v41, %v2231_v37  ;;  %v642_v13 = vshrl.u32 %v2623_v47, %v3593_v34  ;;  %v644_v39 = vshll.u32 %v2623_v47, %v635_v29  ;;  %v645_v2 = vshrl.u32 %v2624_v49, %v3593_v34 }
 0x1b5   : > { %v1680_v20 = vmul.f32 -0.001358992, %v1679_v27  ;;  %v1687_v12 = vmul.f32 -0.00019511016, %v1679_v27  ;;  %v2263_v6 = vadd.s32 %v2262_v42, %v2253_v58  ;;  %v647_v21 = vshll.u32 %v2624_v49, %v635_v29 }
 0x1b6   : > { %vm2266_vm4 = vc.u32 %v3598_v62, %v3595_v32  ;;  %v638_v44 = vshll.u32 %v2621_v43, %v635_v29  ;;  %v639_v40 = vshrl.u32 %v2622_v45, %v3593_v34  ;;  %v3613_v55 = vor.u32 %v642_v13, %v641_v52 }
 0x1b7   : > { %v1681_v5 = vadd.f32 0.041655596, %v1680_v20  ;;  %v1688_v38 = vadd.f32 0.008332121, %v1687_v12  ;;  %v2267_v19 = vadd.s32 1, %v2263_v6  ;;  %v648_v7 = vshrl.u32 %v2625_v51, %v3593_v34 }
 0x1b8   : > { %v650_v1 = vshll.u32 %v2625_v51, %v635_v29  ;;  %v3618_v4 = vor.u32 %v645_v2, %v644_v39  ;;  %v651_v23 = vshrl.u32 %v2626_v60, %v3593_v34  ;;  %vm656_vm6 = vcmp.lt.s32.totalorder %v3600_v8, 4 }
 0x1b9   : > { %v1682_v59 = vmul.f32 %v1681_v5, %v1679_v27  ;;  %v1689_v25 = vmul.f32 %v1688_v38, %v1679_v27  ;;  %v2268_v57 = vsel %vm2266_vm4, %v2267_v19, %v2263_v6  ;;  %v649_v54 = vor.u32 %v648_v7, %v647_v21 }
 0x1ba   : > { %v2269_v28 = vadd.s32 %v2268_v57, %v2264_v61  ;;  %v629_v46 = vor.u32 8388608, %v3491_v50  ;;  %v640_v16 = vor.u32 %v639_v40, %v638_v44  ;;  %v652_v33 = vor.u32 %v651_v23, %v650_v1 }
 0x1bb   : > { %v1683_v26 = vadd.f32 -0.4999988, %v1682_v59  ;;  %v1690_v9 = vadd.f32 -0.16666654, %v1689_v25  ;;  %vm653_vm7 = vcmp.lt.s32.totalorder %v3600_v8, 1  ;;  %vm655_vm8 = vcmp.lt.s32.totalorder %v3600_v8, 3 }
 0x1bc   : > { %v2270_v31 = vadd.s32 536870912, %v2269_v28  ;;  %v1696_v18 = vand.u32 3, %v1695_v17  ;;  %vm654_vm9 = vcmp.lt.s32.totalorder %v3600_v8, 2  ;;  %v662_v35 = vsel %vm656_vm6, %v649_v54, 920167782 }
 0x1bd   : > { %v1684_v3 = vmul.f32 %v1683_v26, %v1679_v27  ;;  %v1691_v30 = vmul.f32 %v1690_v9, %v1679_v27  ;;  %v666_v14 = vsel %vm656_vm6, %v652_v33, 1326507024  ;;  %v665_v29 = vsel %vm653_vm7, %v3613_v55, %v3618_v4 }
 0x1be   : > { %v3631_v53 = vshrl.u32 %v2270_v31, 30  ;;  %vm1694_vm11 = vweird.f32 %v3228_v63  ;;  %v661_v17 = vsel %vm653_vm7, %v640_v16, %v3613_v55  ;;  %v667_v15 = vsel %vm655_vm8, %v649_v54, %v666_v14 }
 0x1bf   : > { %v1685_v22 = vadd.f32 1.0, %v1684_v3  ;;  %v1692_v50 = vadd.f32 1.0, %v1691_v30  ;;  %v3643_v56 = vshll.u32 %v629_v46, 8  ;;  %v663_v41 = vsel %vm655_vm8, %v3618_v4, %v662_v35 }
 0x1c0   : > { %v2272_v37 = vshll.u32 %v3631_v53, 30  ;;  %vm1697_vm10 = vcmp.lt.s32.totalorder %v1696_v18, 2  ;;  %v668_v58 = vsel %vm654_vm9, %v665_v29, %v667_v15  ;;  %vm1698_vm13 = vcmp.eq.s32.totalorder %v1696_v18, 0 }
 0x1c1   : > { %v1693_v61 = vmul.f32 %v1692_v50, %v1677_v36  ;;  %v1702_v27 = vxor.u32 2147483648, %v1685_v22  ;;  %v670_v42 = vand.u32 65535, %v3643_v56  ;;  %v671_v52 = vshrl.u32 %v3643_v56, 16 }
 0x1c2   : > { %vm1701_vm12 = vcmp.eq.s32.totalorder %v1696_v18, 2  ;;  %v2273_v12 = vsub.s32 %v2269_v28, %v2272_v37  ;;  %v637_v36 = vshrl.u32 %v2621_v43, %v3593_v34  ;;  %v664_v6 = vsel %vm654_vm9, %v661_v17, %v663_v41  ;;  %v287_v17 = vpop.f32.mrf.mxu1 }
 0x1c3   : > { %v1699_v20 = vxor.u32 2147483648, %v1693_v61  ;;  %v672_v13 = vand.u32 65535, %v668_v58  ;;  %v673_v39 = vshrl.u32 %v668_v58, 16  ;;  %v1703_v5 = vsel %vm1701_vm12, %v1702_v27, %v1693_v61 }
 0x1c4   : > { %vm2274_vm14 = vcmp.lt.s32.totalorder %v2273_v12, 0  ;;  %v2275_v38 = vsub.s32 0, %v2273_v12  ;;  %v694_v34 = vand.u32 65535, %v664_v6  ;;  %v695_v7 = vshrl.u32 %v664_v6, 16 }
 0x1c5   : > { %v1700_v2 = vsel %vm1698_vm13, %v1685_v22, %v1699_v20  ;;  %v674_v19 = vmul.u32 %v672_v13, %v670_v42  ;;  %v675_v44 = vmul.u32 %v673_v39, %v670_v42  ;;  %v676_v40 = vmul.u32 %v672_v13, %v671_v52 }
 0x1c6   : > { %v1704_v21 = vsel %vm1697_vm10, %v1700_v2, %v1703_v5  ;;  %v2276_v25 = vsel %vm2274_vm14, %v2275_v38, %v2273_v12  ;;  %v2265_v26 = vadd.s32 %v3595_v32, %v3598_v62  ;;  %v657_v9 = vsel %vm653_vm7, %v637_v36, %v640_v16 }
 0x1c7   : > { %v1705_v59 = vsel %vm1694_vm11, nan, %v1704_v21  ;;  %v2277_v1 = vclz %v2276_v25  ;;  %v678_v57 = vshll.u32 %v675_v44, 16  ;;  %v680_v23 = vshll.u32 %v676_v40, 16 }
 0x1c8   : > { %2334 = vst [vmem:[%s3035_s11 + $0x40] sm:$0xff] %v1705_v59  ;;  %v677_v54 = vmul.u32 %v673_v39, %v671_v52  ;;  %vm2173_vm1 = vcmp.lt.s32.totalorder %v3446_v24, 0  ;;  %v696_v33 = vmul.u32 %v694_v34, %v670_v42  ;;  %v697_v3 = vmul.u32 %v695_v7, %v670_v42 }
 0x1c9   : > { %v2479_v28 = vadd.s32 4294967294, %v2277_v1  ;;  %vm682_vm15 = vc.u32 %v674_v19, %v678_v57  ;;  %v684_v46 = vadd.s32 %v678_v57, %v674_v19  ;;  %v698_v30 = vmul.u32 %v694_v34, %v671_v52  ;;  %v299_v57 = vpop.f32.mrf.mxu2 }
 0x1ca   : > { %v683_v63 = vsel %vm682_vm15, 1, %v2627_v0  ;;  %v2295_v31 = vsub.s32 4, %v3631_v53  ;;  %v679_v62 = vshrl.u32 %v675_v44, 16  ;;  %v700_v35 = vshll.u32 %v697_v3, 16 }
 0x1cb   : > { %vm2480_vm0 = vcmp.lt.s32.totalorder %v2479_v28, 0  ;;  %v685_v18 = vadd.s32 %v683_v63, %v677_v54  ;;  %vm686_vm2 = vc.u32 %v684_v46, %v680_v23  ;;  %v699_v29 = vmul.u32 %v695_v7, %v671_v52  ;;  %v3676_v52 = vld [vmem:[%s4222_s2] ss:$0 sm:$0xff] }
 0x1cc   : > { %v2280_v32 = vsel %vm2480_vm0, 0, %v2479_v28  ;;  %v687_v16 = vsel %vm686_vm2, 1, %v2627_v0  ;;  %v702_v61 = vshll.u32 %v698_v30, 16  ;;  %vm704_vm3 = vc.u32 %v696_v33, %v700_v35 }
 0x1cd   : > { %v2281_v14 = vsub.s32 32, %v2280_v32  ;;  %v2285_v22 = vsub.s32 4294967266, %v2280_v32  ;;  %v689_v50 = vadd.s32 %v687_v16, %v685_v18  ;;  %v2282_v15 = vshll.u32 %v2273_v12, %v2280_v32 }
 0x1ce   : > { %v706_v27 = vadd.s32 %v700_v35, %v696_v33  ;;  %v705_v42 = vsel %vm704_vm3, 1, %v2627_v0  ;;  %v658_v20 = vsel %vm656_vm6, %v3618_v4, 2102212464  ;;  %v3679_v12 = vadd.f32 %v3676_v52, %v287_v17 }
 0x1cf   : > { %v2283_v37 = vshrl.u32 %v2265_v26, %v2281_v14  ;;  %v2286_v41 = vadd.s32 127, %v2285_v22  ;;  %v690_v58 = vadd.s32 %v689_v50, %v679_v62  ;;  %v707_v36 = vadd.s32 %v705_v42, %v699_v29 }
 0x1d0   : > { %vm708_vm5 = vc.u32 %v706_v27, %v702_v61  ;;  %v681_v39 = vshrl.u32 %v676_v40, 16  ;;  %v701_v5 = vshrl.u32 %v697_v3, 16  ;;  %v1086_v21 = vand.u32 2147483647, %v3679_v12 }
 0x1d1   : > { %v2284_v6 = vor.u32 %v2283_v37, %v2282_v15  ;;  %v2287_v13 = vshll.u32 %v2286_v41, 23  ;;  %v709_v2 = vsel %vm708_vm5, 1, %v2627_v0  ;;  %v1089_v4 = vand.u32 2139095040, %v3679_v12 }
 0x1d2   : > { %v711_v38 = vadd.s32 %v709_v2, %v707_v36  ;;  %v2296_v44 = vsel %vm2173_vm1, %v2295_v31, %v3631_v53  ;;  %v659_v59 = vsel %vm655_vm8, %v3613_v55, %v658_v20  ;;  %v691_v25 = vadd.s32 %v690_v58, %v681_v39 }
 0x1d3   : > { %v2288_v19 = vor.u32 4788187, %v2287_v13  ;;  %v703_v34 = vshrl.u32 %v698_v30, 16  ;;  %v1090_v7 = vshrl.u32 %v1089_v4, 23  ;;  %v1093_v1 = vand.u32 8388607, %v1086_v21 }
 0x1d4   : > { %v712_v40 = vadd.s32 %v711_v38, %v701_v5  ;;  %v2291_v26 = vcvt.s32.f32 %v2284_v6  ;;  %v710_v28 = vadd.s32 %v706_v27, %v702_v61  ;;  %vm3694_vm4 = vcmp.le.f32.partialorder %v2171_v48, 0.7853982 }
 0x1d5   : > { %v2289_v23 = vand.u32 2147483647, %v2288_v19  ;;  %v660_v55 = vsel %vm654_vm9, %v657_v9, %v659_v59  ;;  %v2457_v46 = vadd.s32 4294967169, %v1090_v7  ;;  %v2298_v33 = vsel %vm3694_vm4, 0, %v2296_v44 }
 0x1d6   : > { %v713_v53 = vadd.s32 %v712_v40, %v703_v34  ;;  %vm716_vm6 = vc.u32 %v691_v25, %v710_v28  ;;  %v3703_v3 = vadd.f32 %v3676_v52, %v299_v57  ;;  %v1094_v31 = vor.u32 8388608, %v1093_v1 }
 0x1d7   : > { %v2292_v63 = vmul.f32 %v2291_v26, %v2289_v23  ;;  %v1096_v18 = vadd.s32 1, %v2457_v46  ;;  %v714_v32 = vmul.u32 %v3643_v56, %v660_v55  ;;  %v2315_v62 = vadd.s32 3, %v2298_v33 }
 0x1d8   : > { %v717_v30 = vadd.s32 1, %v713_v53  ;;  %v1709_v14 = vand.u32 2139095040, %v3703_v3  ;;  %v3714_v29 = vshll.u32 %v1094_v31, 8  ;;  %v1706_v56 = vand.u32 2147483647, %v3703_v3 }
 0x1d9   : > { %v2293_v48 = vxor.u32 2147483648, %v2292_v63  ;;  %vm1097_vm7 = vcmp.gt.s32.totalorder %v1096_v18, 0  ;;  %v3719_v61 = vand.u32 3, %v2315_v62  ;;  %v3721_v27 = vadd.s32 %v710_v28, %v691_v25 }
 0x1da   : > { %v718_v16 = vsel %vm716_vm6, %v717_v30, %v713_v53  ;;  %v1098_v35 = vsel %vm1097_vm7, %v1096_v18, 0  ;;  %v1710_v20 = vshrl.u32 %v1709_v14, 23  ;;  %v3726_v13 = vand.u32 65535, %v3714_v29 }
 0x1db   : > { %v2294_v8 = vsel %vm2173_vm1, %v2293_v48, %v2292_v63  ;;  %v719_v9 = vadd.s32 %v718_v16, %v714_v32  ;;  %v1100_v50 = vand.u32 31, %v1098_v35  ;;  %v3730_v39 = vand.u32 8388607, %v1706_v56 }
 0x1dc   : > { %v3712_v22 = vsel %vm3694_vm4, %v3446_v24, %v2294_v8  ;;  %v3733_v4 = vshrl.u32 %v3714_v29, 16  ;;  %vm623_vm8 = vcmp.lt.s32.totalorder %v3469_v11, 0  ;;  %v3742_v1 = vshrl.u32 %v1098_v35, 5 }
 0x1dd   : > { %v2299_v17 = vmul.f32 %v3712_v22, %v3712_v22  ;;  %v720_v15 = vadd.s32 536870912, %v719_v9  ;;  %v1101_v37 = vsub.s32 32, %v1100_v50  ;;  %v1103_v36 = vshll.u32 %v2621_v43, %v1100_v50 }
 0x1de   : > { %v1106_v19 = vshll.u32 %v2622_v45, %v1100_v50  ;;  %v1112_v59 = vshll.u32 %v2624_v49, %v1100_v50  ;;  %vm2321_vm9 = vcmp.eq.s32.totalorder %v3719_v61, 2  ;;  %v1109_v26 = vshll.u32 %v2623_v47, %v1100_v50 }
 0x1df   : > { %v2300_v41 = vmul.f32 -0.001358992, %v2299_v17  ;;  %v2307_v58 = vmul.f32 -0.00019511016, %v2299_v17  ;;  %v721_v42 = vshrl.u32 %v720_v15, 30  ;;  %v1104_v6 = vshrl.u32 %v2622_v45, %v1101_v37 }
 0x1e0   : > { %v1107_v44 = vshrl.u32 %v2623_v47, %v1101_v37  ;;  %v1113_v25 = vshrl.u32 %v2625_v51, %v1101_v37  ;;  %v1110_v28 = vshrl.u32 %v2624_v49, %v1101_v37  ;;  %vm2318_vm10 = vcmp.eq.s32.totalorder %v3719_v61, 0 }
 0x1e1   : > { %v2301_v2 = vadd.f32 0.041655596, %v2300_v41  ;;  %v2308_v5 = vadd.f32 0.008332121, %v2307_v58  ;;  %v722_v38 = vshll.u32 %v721_v42, 30  ;;  %v745_v57 = vsub.s32 4, %v721_v42 }
 0x1e2   : > { %v3745_v23 = vor.u32 %v1104_v6, %v1103_v36  ;;  %v3752_v46 = vor.u32 %v1107_v44, %v1106_v19  ;;  %v1114_v63 = vor.u32 %v1113_v25, %v1112_v59  ;;  %v1115_v33 = vshll.u32 %v2625_v51, %v1100_v50 }
 0x1e3   : > { %v2302_v34 = vmul.f32 %v2301_v2, %v2299_v17  ;;  %v2309_v40 = vmul.f32 %v2308_v5, %v2299_v17  ;;  %v3740_v7 = vsub.s32 %v719_v9, %v722_v38  ;;  %v1116_v30 = vshrl.u32 %v2626_v60, %v1101_v37 }
 0x1e4   : > { %vm2317_vm13 = vcmp.lt.s32.totalorder %v3719_v61, 2  ;;  %vm1118_vm12 = vcmp.lt.s32.totalorder %v3742_v1, 1  ;;  %vm2314_vm14 = vweird.f32 %v3446_v24  ;;  %v1111_v62 = vor.u32 %v1110_v28, %v1109_v26 }
 0x1e5   : > { %v2303_v54 = vadd.f32 -0.4999988, %v2302_v34  ;;  %v2310_v55 = vadd.f32 -0.16666654, %v2309_v40  ;;  %vm724_vm11 = vcmp.lt.s32.totalorder %v3740_v7, 0  ;;  %v725_v53 = vsub.s32 0, %v3740_v7 }
 0x1e6   : > { %vm1121_vm15 = vcmp.lt.s32.totalorder %v3742_v1, 4  ;;  %v2469_v16 = vadd.s32 4294967169, %v1710_v20  ;;  %vm1120_vm1 = vcmp.lt.s32.totalorder %v3742_v1, 3  ;;  %v1714_v35 = vor.u32 8388608, %v3730_v39 }
 0x1e7   : > { %v2304_v31 = vmul.f32 %v2303_v54, %v2299_v17  ;;  %v2311_v18 = vmul.f32 %v2310_v55, %v2299_v17  ;;  %v726_v48 = vsel %vm724_vm11, %v725_v53, %v3740_v7  ;;  %vm3765_vm0 = vcmp.le.f32.partialorder %v621_v10, 0.7853982 }
 0x1e8   : > { %v727_v32 = vclz %v726_v48  ;;  %v1102_v17 = vshrl.u32 %v2621_v43, %v1101_v37  ;;  %v1117_v15 = vor.u32 %v1116_v30, %v1115_v33  ;;  %v1126_v41 = vsel %vm1118_vm12, %v3745_v23, %v3752_v46 }
 0x1e9   : > { %v2305_v8 = vadd.f32 1.0, %v2304_v31  ;;  %v2312_v9 = vadd.f32 1.0, %v2311_v18  ;;  %v3777_v36 = vsel %vm623_vm8, %v745_v57, %v721_v42  ;;  %v1127_v10 = vsel %vm1121_vm15, %v1114_v63, 920167782 }
 0x1ea   : > { %v2449_v50 = vadd.s32 4294967294, %v727_v32  ;;  %vm1119_vm3 = vcmp.lt.s32.totalorder %v3742_v1, 2  ;;  %v1128_v37 = vsel %vm1120_vm1, %v1111_v62, %v1127_v10  ;;  %v1130_v6 = vsel %vm1118_vm12, %v3752_v46, %v1111_v62 }
 0x1eb   : > { %v2313_v58 = vmul.f32 %v2312_v9, %v3712_v22  ;;  %v2322_v20 = vxor.u32 2147483648, %v2305_v8  ;;  %v1129_v42 = vsel %vm1119_vm3, %v1126_v41, %v1128_v37  ;;  %v1131_v59 = vsel %vm1121_vm15, %v1117_v15, 1326507024 }
 0x1ec   : > { %vm2450_vm2 = vcmp.lt.s32.totalorder %v2449_v50, 0  ;;  %v1132_v34 = vsel %vm1120_vm1, %v1114_v63, %v1131_v59  ;;  %v1159_v40 = vand.u32 65535, %v1129_v42  ;;  %v1160_v57 = vshrl.u32 %v1129_v42, 16 }
 0x1ed   : > { %v2319_v2 = vxor.u32 2147483648, %v2313_v58  ;;  %v2323_v22 = vsel %vm2321_vm9, %v2322_v20, %v2313_v58  ;;  %v730_v5 = vsel %vm2450_vm2, 0, %v2449_v50  ;;  %v1716_v30 = vadd.s32 1, %v2469_v16 }
 0x1ee   : > { %v731_v38 = vsub.s32 32, %v730_v5  ;;  %v732_v19 = vshll.u32 %v3740_v7, %v730_v5  ;;  %v735_v44 = vsub.s32 4294967266, %v730_v5  ;;  %v1133_v7 = vsel %vm1119_vm3, %v1130_v6, %v1132_v34 }
 0x1ef   : > { %v2320_v25 = vsel %vm2318_vm10, %v2305_v8, %v2319_v2  ;;  %v1137_v53 = vand.u32 65535, %v1133_v7  ;;  %v1138_v33 = vshrl.u32 %v1133_v7, 16  ;;  %v1162_v18 = vmul.u32 %v1160_v57, %v3726_v13 }
 0x1f0   : > { %v2324_v26 = vsel %vm2317_vm13, %v2320_v25, %v2323_v22  ;;  %v733_v28 = vshrl.u32 %v3721_v27, %v731_v38  ;;  %v736_v54 = vadd.s32 127, %v735_v44  ;;  %v1163_v61 = vmul.u32 %v1159_v40, %v3733_v4 }
 0x1f1   : > { %v2325_v55 = vsel %vm2314_vm14, nan, %v2324_v26  ;;  %v748_v27 = vsel %vm3765_vm0, 0, %v3777_v36  ;;  %v1122_v48 = vsel %vm1118_vm12, %v1102_v17, %v3745_v23  ;;  %v1140_v24 = vmul.u32 %v1138_v33, %v3726_v13 }
 0x1f2   : > { %2338 = vst [vmem:[%s3035_s11 + $0x60] sm:$0xff] %v2325_v55  ;;  %v734_v31 = vor.u32 %v733_v28, %v732_v19  ;;  %v737_v63 = vshll.u32 %v736_v54, 23  ;;  %v1141_v32 = vmul.u32 %v1137_v53, %v3733_v4  ;;  %v1123_v8 = vsel %vm1121_vm15, %v1111_v62, 2102212464 }
 0x1f3   : > { %v1161_v9 = vmul.u32 %v1159_v40, %v3726_v13  ;;  %v1165_v50 = vshll.u32 %v1162_v18, 16  ;;  %v1139_v41 = vmul.u32 %v1137_v53, %v3726_v13  ;;  %v1142_v58 = vmul.u32 %v1138_v33, %v3733_v4 }
 0x1f4   : > { %v738_v16 = vor.u32 4788187, %v737_v63  ;;  %v741_v15 = vcvt.s32.f32 %v734_v31  ;;  %v1143_v20 = vshll.u32 %v1140_v24, 16  ;;  %v1145_v10 = vshll.u32 %v1141_v32, 16 }
 0x1f5   : > { %v1164_v23 = vmul.u32 %v1160_v57, %v3733_v4  ;;  %v1167_v17 = vshll.u32 %v1163_v61, 16  ;;  %vm1169_vm4 = vc.u32 %v1161_v9, %v1165_v50  ;;  %v1171_v6 = vadd.s32 %v1165_v50, %v1161_v9 }
 0x1f6   : > { %v739_v36 = vand.u32 2147483647, %v738_v16  ;;  %vm1147_vm5 = vc.u32 %v1139_v41, %v1143_v20  ;;  %v1149_v37 = vadd.s32 %v1143_v20, %v1139_v41  ;;  %v1124_v62 = vsel %vm1120_vm1, %v3752_v46, %v1123_v8 }
 0x1f7   : > { %v1148_v22 = vsel %vm1147_vm5, 1, %v2627_v0  ;;  %v1170_v13 = vsel %vm1169_vm4, 1, %v2627_v0  ;;  %vm1173_vm7 = vc.u32 %v1171_v6, %v1167_v17  ;;  %v1144_v4 = vshrl.u32 %v1140_v24, 16 }
 0x1f8   : > { %v742_v2 = vmul.f32 %v741_v15, %v739_v36  ;;  %v1150_v5 = vadd.s32 %v1148_v22, %v1142_v58  ;;  %vm1151_vm6 = vc.u32 %v1149_v37, %v1145_v10  ;;  %v1172_v42 = vadd.s32 %v1170_v13, %v1164_v23 }
 0x1f9   : > { %v1152_v19 = vsel %vm1151_vm6, 1, %v2627_v0  ;;  %v1174_v44 = vsel %vm1173_vm7, 1, %v2627_v0  ;;  %v1166_v25 = vshrl.u32 %v1162_v18, 16  ;;  %vm1717_vm9 = vcmp.gt.s32.totalorder %v1716_v30, 0 }
 0x1fa   : > { %v743_v38 = vxor.u32 2147483648, %v742_v2  ;;  %v1154_v59 = vadd.s32 %v1152_v19, %v1150_v5  ;;  %v1176_v34 = vadd.s32 %v1174_v44, %v1172_v42  ;;  %v765_v40 = vadd.s32 3, %v748_v27 }
 0x1fb   : > { %v1146_v57 = vshrl.u32 %v1141_v32, 16  ;;  %v1718_v26 = vsel %vm1717_vm9, %v1716_v30, 0  ;;  %v1168_v7 = vshrl.u32 %v1163_v61, 16  ;;  %v1125_v33 = vsel %vm1119_vm3, %v1122_v48, %v1124_v62 }
 0x1fc   : > { %v744_v46 = vsel %vm623_vm8, %v743_v38, %v742_v2  ;;  %v1155_v54 = vadd.s32 %v1154_v59, %v1144_v4  ;;  %v1177_v55 = vadd.s32 %v1176_v34, %v1166_v25  ;;  %v1720_v31 = vand.u32 31, %v1718_v26 }
 0x1fd   : > { %v747_v28 = vsel %vm3765_vm0, %v3469_v11, %v744_v46  ;;  %v3838_v18 = vadd.s32 %v1171_v6, %v1167_v17  ;;  %v3840_v30 = vand.u32 3, %v765_v40  ;;  %v1179_v14 = vmul.u32 %v3714_v29, %v1125_v33 }
 0x1fe   : > { %v749_v53 = vmul.f32 %v747_v28, %v747_v28  ;;  %v3836_v63 = vadd.s32 %v1155_v54, %v1146_v57  ;;  %v1178_v24 = vadd.s32 %v1177_v55, %v1168_v7  ;;  %v3842_v16 = vsub.s32 32, %v1720_v31 }
 0x1ff   : > { %v3849_v1 = vshll.u32 %v1714_v35, 8  ;;  %v3851_v9 = vshrl.u32 %v1718_v26, 5  ;;  %v1723_v41 = vshll.u32 %v2621_v43, %v1720_v31  ;;  %v1726_v36 = vshll.u32 %v2622_v45, %v1720_v31 }
 0x200   : > { %v750_v27 = vmul.f32 -0.001358992, %v749_v53  ;;  %v757_v32 = vmul.f32 -0.00019511016, %v749_v53  ;;  %vm1181_vm8 = vc.u32 %v3836_v63, %v3838_v18  ;;  %v1182_v61 = vadd.s32 1, %v1178_v24 }
 0x201   : > { %v1724_v50 = vshrl.u32 %v2622_v45, %v3842_v16  ;;  %v1727_v29 = vshrl.u32 %v2623_v47, %v3842_v16  ;;  %v1730_v58 = vshrl.u32 %v2624_v49, %v3842_v16  ;;  %v1729_v23 = vshll.u32 %v2623_v47, %v1720_v31 }
 0x202   : > { %v751_v48 = vadd.f32 0.041655596, %v750_v27  ;;  %v758_v8 = vadd.f32 0.008332121, %v757_v32  ;;  %v1183_v15 = vsel %vm1181_vm8, %v1182_v61, %v1178_v24  ;;  %v1732_v17 = vshll.u32 %v2624_v49, %v1720_v31 }
 0x203   : > { %v1184_v35 = vadd.s32 %v1183_v15, %v1179_v14  ;;  %v3861_v10 = vor.u32 %v1724_v50, %v1723_v41  ;;  %v1733_v37 = vshrl.u32 %v2625_v51, %v3842_v16  ;;  %v3867_v22 = vor.u32 %v1727_v29, %v1726_v36 }
 0x204   : > { %v752_v20 = vmul.f32 %v751_v48, %v749_v53  ;;  %v759_v39 = vmul.f32 %v758_v8, %v749_v53  ;;  %v1731_v13 = vor.u32 %v1730_v58, %v1729_v23  ;;  %v1735_v42 = vshll.u32 %v2625_v51, %v1720_v31  ;;  %v290_v58 = vpop.f32.mrf.mxu1 }
 0x205   : > { %v1185_v62 = vadd.s32 536870912, %v1184_v35  ;;  %v1734_v5 = vor.u32 %v1733_v37, %v1732_v17  ;;  %v1736_v38 = vshrl.u32 %v2626_v60, %v3842_v16  ;;  %vm1741_vm11 = vcmp.lt.s32.totalorder %v3851_v9, 4 }
 0x206   : > { %v753_v6 = vadd.f32 -0.4999988, %v752_v20  ;;  %v760_v2 = vadd.f32 -0.16666654, %v759_v39  ;;  %vm1738_vm10 = vcmp.lt.s32.totalorder %v3851_v9, 1  ;;  %vm1740_vm13 = vcmp.lt.s32.totalorder %v3851_v9, 3 }
 0x207   : > { %v3872_v44 = vshrl.u32 %v1185_v62, 30  ;;  %v1737_v59 = vor.u32 %v1736_v38, %v1735_v42  ;;  %v1747_v25 = vsel %vm1741_vm11, %v1734_v5, 920167782  ;;  %v1746_v57 = vsel %vm1738_vm10, %v3861_v10, %v3867_v22 }
 0x208   : > { %v754_v4 = vmul.f32 %v753_v6, %v749_v53  ;;  %v761_v19 = vmul.f32 %v760_v2, %v749_v53  ;;  %vm767_vm12 = vcmp.lt.s32.totalorder %v3840_v30, 2  ;;  %vm1739_vm14 = vcmp.lt.s32.totalorder %v3851_v9, 2 }
 0x209   : > { %v1187_v40 = vshll.u32 %v3872_v44, 30  ;;  %v1748_v26 = vsel %vm1740_vm13, %v1731_v13, %v1747_v25  ;;  %v1751_v54 = vsel %vm1741_vm11, %v1737_v59, 1326507024  ;;  %v1750_v33 = vsel %vm1738_vm10, %v3867_v22, %v1731_v13 }
 0x20a   : > { %v755_v34 = vadd.f32 1.0, %v754_v4  ;;  %v762_v46 = vadd.f32 1.0, %v761_v19  ;;  %vm768_vm15 = vcmp.eq.s32.totalorder %v3840_v30, 0  ;;  %vm771_vm1 = vcmp.eq.s32.totalorder %v3840_v30, 2 }
 0x20b   : > { %v1188_v53 = vsub.s32 %v1184_v35, %v1187_v40  ;;  %v1749_v31 = vsel %vm1739_vm14, %v1746_v57, %v1748_v26  ;;  %v1752_v24 = vsel %vm1740_vm13, %v1734_v5, %v1751_v54  ;;  %v1756_v48 = vshrl.u32 %v3849_v1, 16 }
 0x20c   : > { %v763_v7 = vmul.f32 %v762_v46, %v747_v28  ;;  %v772_v55 = vxor.u32 2147483648, %v755_v34  ;;  %v1755_v28 = vand.u32 65535, %v3849_v1  ;;  %v1753_v61 = vsel %vm1739_vm14, %v1750_v33, %v1752_v24 }
 0x20d   : > { %vm1189_vm0 = vcmp.lt.s32.totalorder %v1188_v53, 0  ;;  %v1190_v32 = vsub.s32 0, %v1188_v53  ;;  %v1779_v8 = vand.u32 65535, %v1749_v31  ;;  %v1757_v41 = vand.u32 65535, %v1753_v61 }
 0x20e   : > { %v769_v27 = vxor.u32 2147483648, %v763_v7  ;;  %v773_v14 = vsel %vm771_vm1, %v772_v55, %v763_v7  ;;  %v1758_v29 = vshrl.u32 %v1753_v61, 16  ;;  %vm764_vm2 = vweird.f32 %v3469_v11 }
 0x20f   : > { %v1191_v15 = vsel %vm1189_vm0, %v1190_v32, %v1188_v53  ;;  %v1780_v35 = vshrl.u32 %v1749_v31, 16  ;;  %v1761_v17 = vmul.u32 %v1757_v41, %v1756_v48  ;;  %v1180_v37 = vadd.s32 %v3838_v18, %v3836_v63 }
 0x210   : > { %v770_v50 = vsel %vm768_vm15, %v755_v34, %v769_v27  ;;  %v1192_v39 = vclz %v1191_v15  ;;  %v1760_v23 = vmul.u32 %v1758_v29, %v1755_v28  ;;  %v1722_v2 = vshrl.u32 %v2621_v43, %v3842_v16 }
 0x211   : > { %v774_v20 = vsel %vm767_vm12, %v770_v50, %v773_v14  ;;  %v3912_v62 = vadd.f32 %v3676_v52, %v290_v58  ;;  %v1743_v11 = vsel %vm1741_vm11, %v1731_v13, 2102212464  ;;  %v1759_v30 = vmul.u32 %v1757_v41, %v1755_v28 }
 0x212   : > { %v775_v36 = vsel %vm764_vm2, nan, %v774_v20  ;;  %v2458_v6 = vadd.s32 4294967294, %v1192_v39  ;;  %v1763_v5 = vshll.u32 %v1760_v23, 16  ;;  %v1781_v42 = vmul.u32 %v1779_v8, %v1755_v28 }
 0x213   : > { %2328 = vst [vmem:[%s3035_s11 + $0x10] sm:$0xff] %v775_v36  ;;  %v1762_v38 = vmul.u32 %v1758_v29, %v1756_v48  ;;  %v1765_v4 = vshll.u32 %v1761_v17, 16  ;;  %v1782_v19 = vmul.u32 %v1780_v35, %v1755_v28  ;;  %vm1088_vm5 = vcmp.lt.s32.totalorder %v3679_v12, 0 }
 0x214   : > { %vm2459_vm3 = vcmp.lt.s32.totalorder %v2458_v6, 0  ;;  %vm1767_vm4 = vc.u32 %v1759_v30, %v1763_v5  ;;  %v1769_v18 = vadd.s32 %v1763_v5, %v1759_v30  ;;  %v1783_v59 = vmul.u32 %v1779_v8, %v1756_v48 }
 0x215   : > { %v1195_v63 = vsel %vm2459_vm3, 0, %v2458_v6  ;;  %v1764_v34 = vshrl.u32 %v1760_v23, 16  ;;  %v1768_v46 = vsel %vm1767_vm4, 1, %v2627_v0  ;;  %v1784_v13 = vmul.u32 %v1780_v35, %v1756_v48 }
 0x216   : > { %v1196_v16 = vsub.s32 32, %v1195_v63  ;;  %v1200_v25 = vsub.s32 4294967266, %v1195_v63  ;;  %v1770_v40 = vadd.s32 %v1768_v46, %v1762_v38  ;;  %vm1771_vm6 = vc.u32 %v1769_v18, %v1765_v4 }
 0x217   : > { %v1785_v57 = vshll.u32 %v1782_v19, 16  ;;  %v1197_v26 = vshll.u32 %v1188_v53, %v1195_v63  ;;  %v1772_v55 = vsel %vm1771_vm6, 1, %v2627_v0  ;;  %v1787_v31 = vshll.u32 %v1783_v59, 16 }
 0x218   : > { %v1198_v54 = vshrl.u32 %v1180_v37, %v1196_v16  ;;  %v1201_v7 = vadd.s32 127, %v1200_v25  ;;  %v1774_v33 = vadd.s32 %v1772_v55, %v1770_v40  ;;  %v1210_v28 = vsub.s32 4, %v3872_v44  ;;  %v302_v16 = vpop.f32.mrf.mxu2 }
 0x219   : > { %vm1789_vm7 = vc.u32 %v1781_v42, %v1785_v57  ;;  %v1791_v24 = vadd.s32 %v1785_v57, %v1781_v42  ;;  %v1742_v61 = vsel %vm1738_vm10, %v1722_v2, %v3861_v10  ;;  %v1766_v50 = vshrl.u32 %v1761_v17, 16 }
 0x21a   : > { %v1199_v27 = vor.u32 %v1198_v54, %v1197_v26  ;;  %v1202_v32 = vshll.u32 %v1201_v7, 23  ;;  %v1790_v14 = vsel %vm1789_vm7, 1, %v2627_v0  ;;  %v1775_v48 = vadd.s32 %v1774_v33, %v1764_v34 }
 0x21b   : > { %v1792_v53 = vadd.s32 %v1790_v14, %v1784_v13  ;;  %vm1793_vm9 = vc.u32 %v1791_v24, %v1787_v31  ;;  %v1241_v41 = vand.u32 2147483647, %v3912_v62  ;;  %v1744_v29 = vsel %vm1740_vm13, %v3867_v22, %v1743_v11 }
 0x21c   : > { %v1203_v8 = vor.u32 4788187, %v1202_v32  ;;  %v1794_v15 = vsel %vm1793_vm9, 1, %v2627_v0  ;;  %v1786_v58 = vshrl.u32 %v1782_v19, 16  ;;  %v1244_v39 = vand.u32 2139095040, %v3912_v62 }
 0x21d   : > { %v1796_v20 = vadd.s32 %v1794_v15, %v1792_v53  ;;  %v1206_v36 = vcvt.s32.f32 %v1199_v27  ;;  %v1211_v10 = vsel %vm1088_vm5, %v1210_v28, %v3872_v44  ;;  %v1776_v23 = vadd.s32 %v1775_v48, %v1766_v50 }
 0x21e   : > { %v1204_v35 = vand.u32 2147483647, %v1203_v8  ;;  %v1788_v17 = vshrl.u32 %v1783_v59, 16  ;;  %v1245_v6 = vshrl.u32 %v1244_v39, 23  ;;  %v1248_v2 = vand.u32 8388607, %v1241_v41 }
 0x21f   : > { %v1797_v37 = vadd.s32 %v1796_v20, %v1786_v58  ;;  %v1795_v5 = vadd.s32 %v1791_v24, %v1787_v31  ;;  %vm1087_vm8 = vcmp.le.f32.partialorder %v1086_v21, 0.7853982  ;;  %v1745_v22 = vsel %vm1739_vm14, %v1742_v61, %v1744_v29 }
 0x220   : > { %v1207_v30 = vmul.f32 %v1206_v36, %v1204_v35  ;;  %v2460_v42 = vadd.s32 4294967169, %v1245_v6  ;;  %v1213_v4 = vsel %vm1087_vm8, 0, %v1211_v10  ;;  %v1249_v19 = vor.u32 8388608, %v1248_v2 }
 0x221   : > { %v1798_v11 = vadd.s32 %v1797_v37, %v1788_v17  ;;  %vm1801_vm11 = vc.u32 %v1776_v23, %v1795_v5  ;;  %v1799_v59 = vmul.u32 %v3849_v1, %v1745_v22  ;;  %v1230_v21 = vadd.s32 3, %v1213_v4 }
 0x222   : > { %v1208_v38 = vxor.u32 2147483648, %v1207_v30  ;;  %v1251_v63 = vadd.s32 1, %v2460_v42  ;;  %v3943_v57 = vshll.u32 %v1249_v19, 8  ;;  %v3946_v26 = vadd.f32 %v3676_v52, %v302_v16 }
 0x223   : > { %v1802_v44 = vadd.s32 1, %v1798_v11  ;;  %v3948_v33 = vand.u32 3, %v1230_v21  ;;  %v3950_v27 = vadd.s32 %v1795_v5, %v1776_v23  ;;  %vm1708_vm13 = vcmp.lt.s32.totalorder %v3703_v3, 0 }
 0x224   : > { %v1209_v18 = vsel %vm1088_vm5, %v1208_v38, %v1207_v30  ;;  %vm1252_vm10 = vcmp.gt.s32.totalorder %v1251_v63, 0  ;;  %v3954_v14 = vand.u32 65535, %v3943_v57  ;;  %v1861_v61 = vand.u32 2147483647, %v3946_v26 }
 0x225   : > { %v1212_v25 = vsel %vm1087_vm8, %v3679_v12, %v1209_v18  ;;  %v1803_v34 = vsel %vm1801_vm11, %v1802_v44, %v1798_v11  ;;  %v1253_v40 = vsel %vm1252_vm10, %v1251_v63, 0  ;;  %v1864_v52 = vand.u32 2139095040, %v3946_v26 }
 0x226   : > { %v1214_v9 = vmul.f32 %v1212_v25, %v1212_v25  ;;  %v1804_v46 = vadd.s32 %v1803_v34, %v1799_v59  ;;  %v1255_v13 = vand.u32 31, %v1253_v40  ;;  %vm1236_vm12 = vcmp.eq.s32.totalorder %v3948_v33, 2 }
 0x227   : > { %v3967_v10 = vshrl.u32 %v1253_v40, 5  ;;  %vm1233_vm14 = vcmp.eq.s32.totalorder %v3948_v33, 0  ;;  %vm1232_vm15 = vcmp.lt.s32.totalorder %v3948_v33, 2  ;;  %vm1229_vm0 = vweird.f32 %v3679_v12 }
 0x228   : > { %v1215_v54 = vmul.f32 -0.001358992, %v1214_v9  ;;  %v1222_v7 = vmul.f32 -0.00019511016, %v1214_v9  ;;  %v1805_v55 = vadd.s32 536870912, %v1804_v46  ;;  %v1256_v1 = vsub.s32 32, %v1255_v13 }
 0x229   : > { %v1258_v28 = vshll.u32 %v2621_v43, %v1255_v13  ;;  %v1261_v50 = vshll.u32 %v2622_v45, %v1255_v13  ;;  %v1267_v58 = vshll.u32 %v2624_v49, %v1255_v13  ;;  %v1264_v23 = vshll.u32 %v2623_v47, %v1255_v13 }
 0x22a   : > { %v1216_v31 = vadd.f32 0.041655596, %v1215_v54  ;;  %v1223_v24 = vadd.f32 0.008332121, %v1222_v7  ;;  %v1806_v32 = vshrl.u32 %v1805_v55, 30  ;;  %v1259_v15 = vshrl.u32 %v2622_v45, %v1256_v1 }
 0x22b   : > { %v1262_v29 = vshrl.u32 %v2623_v47, %v1256_v1  ;;  %v1268_v20 = vshrl.u32 %v2625_v51, %v1256_v1  ;;  %v1265_v17 = vshrl.u32 %v2624_v49, %v1256_v1  ;;  %v1270_v37 = vshll.u32 %v2625_v51, %v1255_v13 }
 0x22c   : > { %v1217_v48 = vmul.f32 %v1216_v31, %v1214_v9  ;;  %v1224_v53 = vmul.f32 %v1223_v24, %v1214_v9  ;;  %v1807_v8 = vshll.u32 %v1806_v32, 30  ;;  %v1271_v6 = vshrl.u32 %v2626_v60, %v1256_v1 }
 0x22d   : > { %v1830_v22 = vsub.s32 4, %v1806_v32  ;;  %v1260_v11 = vor.u32 %v1259_v15, %v1258_v28  ;;  %v1263_v42 = vor.u32 %v1262_v29, %v1261_v50  ;;  %v1269_v38 = vor.u32 %v1268_v20, %v1267_v58 }
 0x22e   : > { %v1218_v39 = vadd.f32 -0.4999988, %v1217_v48  ;;  %v1225_v35 = vadd.f32 -0.16666654, %v1224_v53  ;;  %v3965_v36 = vsub.s32 %v1804_v46, %v1807_v8  ;;  %vm1273_vm2 = vcmp.lt.s32.totalorder %v3967_v10, 1 }
 0x22f   : > { %v1266_v18 = vor.u32 %v1265_v17, %v1264_v23  ;;  %vm1276_vm3 = vcmp.lt.s32.totalorder %v3967_v10, 4  ;;  %v1291_v59 = vshrl.u32 %v3943_v57, 16  ;;  %vm3984_vm5 = vcmp.le.f32.partialorder %v1706_v56, 0.7853982 }
 0x230   : > { %v1219_v2 = vmul.f32 %v1218_v39, %v1214_v9  ;;  %v1226_v30 = vmul.f32 %v1225_v35, %v1214_v9  ;;  %vm1809_vm1 = vcmp.lt.s32.totalorder %v3965_v36, 0  ;;  %v1810_v5 = vsub.s32 0, %v3965_v36 }
 0x231   : > { %v1272_v9 = vor.u32 %v1271_v6, %v1270_v37  ;;  %vm1275_vm4 = vcmp.lt.s32.totalorder %v3967_v10, 3  ;;  %v1257_v40 = vshrl.u32 %v2621_v43, %v1256_v1  ;;  %v1281_v13 = vsel %vm1273_vm2, %v1260_v11, %v1263_v42 }
 0x232   : > { %v1220_v4 = vadd.f32 1.0, %v1219_v2  ;;  %v1227_v44 = vadd.f32 1.0, %v1226_v30  ;;  %v1811_v19 = vsel %vm1809_vm1, %v1810_v5, %v3965_v36  ;;  %v1865_v54 = vshrl.u32 %v1864_v52, 23 }
 0x233   : > { %v1812_v63 = vclz %v1811_v19  ;;  %vm1274_vm6 = vcmp.lt.s32.totalorder %v3967_v10, 2  ;;  %v1282_v56 = vsel %vm1276_vm3, %v1269_v38, 920167782  ;;  %v1285_v31 = vsel %vm1273_vm2, %v1263_v42, %v1266_v18 }
 0x234   : > { %v1228_v16 = vmul.f32 %v1227_v44, %v1212_v25  ;;  %v1237_v21 = vxor.u32 2147483648, %v1220_v4  ;;  %v3994_v25 = vsel %vm1708_vm13, %v1830_v22, %v1806_v32  ;;  %v1283_v1 = vsel %vm1275_vm4, %v1266_v18, %v1282_v56 }
 0x235   : > { %v2470_v46 = vadd.s32 4294967294, %v1812_v63  ;;  %v1284_v28 = vsel %vm1274_vm6, %v1281_v13, %v1283_v1  ;;  %v1286_v52 = vsel %vm1276_vm3, %v1272_v9, 1326507024  ;;  %v1278_v50 = vsel %vm1276_vm3, %v1266_v18, 2102212464 }
 0x236   : > { %v1234_v7 = vxor.u32 2147483648, %v1228_v16  ;;  %v1238_v55 = vsel %vm1236_vm12, %v1237_v21, %v1228_v16  ;;  %v1287_v29 = vsel %vm1275_vm4, %v1269_v38, %v1286_v52  ;;  %v1314_v58 = vand.u32 65535, %v1284_v28 }
 0x237   : > { %vm2471_vm7 = vcmp.lt.s32.totalorder %v2470_v46, 0  ;;  %v1315_v20 = vshrl.u32 %v1284_v28, 16  ;;  %v1288_v23 = vsel %vm1274_vm6, %v1285_v31, %v1287_v29  ;;  %v2472_v12 = vadd.s32 4294967169, %v1865_v54 }
 0x238   : > { %v1235_v24 = vsel %vm1233_vm14, %v1220_v4, %v1234_v7  ;;  %v1815_v32 = vsel %vm2471_vm7, 0, %v2470_v46  ;;  %v1292_v17 = vand.u32 65535, %v1288_v23  ;;  %v1293_v37 = vshrl.u32 %v1288_v23, 16 }
 0x239   : > { %v1239_v48 = vsel %vm1232_vm15, %v1235_v24, %v1238_v55  ;;  %v1816_v53 = vsub.s32 32, %v1815_v32  ;;  %v1820_v8 = vsub.s32 4294967266, %v1815_v32  ;;  %v1817_v39 = vshll.u32 %v3965_v36, %v1815_v32 }
 0x23a   : > { %v1240_v15 = vsel %vm1229_vm0, nan, %v1239_v48  ;;  %v1317_v6 = vmul.u32 %v1315_v20, %v3954_v14  ;;  %v1833_v5 = vsel %vm3984_vm5, 0, %v3994_v25  ;;  %v1318_v22 = vmul.u32 %v1314_v58, %v1291_v59 }
 0x23b   : > { %2331 = vst [vmem:[%s3035_s11 + $0x28] sm:$0xff] %v1240_v15  ;;  %v1818_v35 = vshrl.u32 %v3950_v27, %v1816_v53  ;;  %v1821_v33 = vadd.s32 127, %v1820_v8  ;;  %v1277_v36 = vsel %vm1273_vm2, %v1257_v40, %v1260_v11  ;;  %v1279_v27 = vsel %vm1275_vm4, %v1263_v42, %v1278_v50 }
 0x23c   : > { %v1295_v38 = vmul.u32 %v1293_v37, %v3954_v14  ;;  %v1296_v4 = vmul.u32 %v1292_v17, %v1291_v59  ;;  %v1316_v19 = vmul.u32 %v1314_v58, %v3954_v14  ;;  %v1319_v63 = vmul.u32 %v1315_v20, %v1291_v59 }
 0x23d   : > { %v1819_v2 = vor.u32 %v1818_v35, %v1817_v39  ;;  %v1822_v30 = vshll.u32 %v1821_v33, 23  ;;  %v1320_v18 = vshll.u32 %v1317_v6, 16  ;;  %v1294_v21 = vmul.u32 %v1292_v17, %v3954_v14 }
 0x23e   : > { %v1297_v9 = vmul.u32 %v1293_v37, %v1291_v59  ;;  %v1298_v46 = vshll.u32 %v1295_v38, 16  ;;  %v1300_v54 = vshll.u32 %v1296_v4, 16  ;;  %v1322_v7 = vshll.u32 %v1318_v22, 16 }
 0x23f   : > { %v1823_v44 = vor.u32 4788187, %v1822_v30  ;;  %v1826_v16 = vcvt.s32.f32 %v1819_v2  ;;  %vm1324_vm9 = vc.u32 %v1316_v19, %v1320_v18  ;;  %v1326_v40 = vadd.s32 %v1320_v18, %v1316_v19 }
 0x240   : > { %vm1302_vm8 = vc.u32 %v1294_v21, %v1298_v46  ;;  %v1304_v11 = vadd.s32 %v1298_v46, %v1294_v21  ;;  %v1325_v42 = vsel %vm1324_vm9, 1, %v2627_v0  ;;  %v1871_v1 = vadd.s32 1, %v2472_v12 }
 0x241   : > { %v1824_v13 = vand.u32 2147483647, %v1823_v44  ;;  %v1303_v56 = vsel %vm1302_vm8, 1, %v2627_v0  ;;  %v1327_v55 = vadd.s32 %v1325_v42, %v1319_v63  ;;  %v1321_v24 = vshrl.u32 %v1317_v6, 16 }
 0x242   : > { %v1305_v31 = vadd.s32 %v1303_v56, %v1297_v9  ;;  %vm1306_vm11 = vc.u32 %v1304_v11, %v1300_v54  ;;  %vm1328_vm10 = vc.u32 %v1326_v40, %v1322_v7  ;;  %vm1872_vm12 = vcmp.gt.s32.totalorder %v1871_v1, 0 }
 0x243   : > { %v1827_v25 = vmul.f32 %v1826_v16, %v1824_v13  ;;  %v1307_v59 = vsel %vm1306_vm11, 1, %v2627_v0  ;;  %v1329_v32 = vsel %vm1328_vm10, 1, %v2627_v0  ;;  %v1299_v28 = vshrl.u32 %v1295_v38, 16 }
 0x244   : > { %v1309_v52 = vadd.s32 %v1307_v59, %v1305_v31  ;;  %v1331_v48 = vadd.s32 %v1329_v32, %v1327_v55  ;;  %v1873_v53 = vsel %vm1872_vm12, %v1871_v1, 0  ;;  %v1280_v50 = vsel %vm1274_vm6, %v1277_v36, %v1279_v27 }
 0x245   : > { %v1828_v14 = vxor.u32 2147483648, %v1827_v25  ;;  %v1301_v15 = vshrl.u32 %v1296_v4, 16  ;;  %v1875_v29 = vand.u32 31, %v1873_v53  ;;  %v1323_v39 = vshrl.u32 %v1318_v22, 16 }
 0x246   : > { %v1310_v20 = vadd.s32 %v1309_v52, %v1299_v28  ;;  %v1332_v35 = vadd.s32 %v1331_v48, %v1321_v24  ;;  %v1868_v23 = vand.u32 8388607, %v1861_v61  ;;  %v1850_v37 = vadd.s32 3, %v1833_v5 }
 0x247   : > { %v1829_v8 = vsel %vm1708_vm13, %v1828_v14, %v1827_v25  ;;  %v4048_v17 = vsub.s32 32, %v1875_v29  ;;  %v4052_v10 = vadd.s32 %v1326_v40, %v1322_v7  ;;  %v1334_v34 = vmul.u32 %v3943_v57, %v1280_v50 }
 0x248   : > { %v1832_v58 = vsel %vm3984_vm5, %v3703_v3, %v1829_v8  ;;  %v4050_v6 = vadd.s32 %v1310_v20, %v1301_v15  ;;  %v1333_v12 = vadd.s32 %v1332_v35, %v1323_v39  ;;  %v4055_v36 = vshrl.u32 %v1873_v53, 5 }
 0x249   : > { %v1834_v33 = vmul.f32 %v1832_v58, %v1832_v58  ;;  %v1878_v27 = vshll.u32 %v2621_v43, %v1875_v29  ;;  %v1882_v5 = vshrl.u32 %v2623_v47, %v4048_v17  ;;  %v1881_v44 = vshll.u32 %v2622_v45, %v1875_v29 }
 0x24a   : > { %vm1336_vm13 = vc.u32 %v4050_v6, %v4052_v10  ;;  %v1337_v22 = vadd.s32 1, %v1333_v12  ;;  %v1885_v19 = vshrl.u32 %v2624_v49, %v4048_v17  ;;  %v1879_v57 = vshrl.u32 %v2622_v45, %v4048_v17 }
 0x24b   : > { %v1835_v2 = vmul.f32 -0.001358992, %v1834_v33  ;;  %v1842_v30 = vmul.f32 -0.00019511016, %v1834_v33  ;;  %v1887_v18 = vshll.u32 %v2624_v49, %v1875_v29  ;;  %v1888_v16 = vshrl.u32 %v2625_v51, %v4048_v17 }
 0x24c   : > { %v1338_v63 = vsel %vm1336_vm13, %v1337_v22, %v1333_v12  ;;  %v1884_v13 = vshll.u32 %v2623_v47, %v1875_v29  ;;  %v4071_v54 = vor.u32 %v1882_v5, %v1881_v44  ;;  %v1890_v11 = vshll.u32 %v2625_v51, %v1875_v29 }
 0x24d   : > { %v1836_v38 = vadd.f32 0.041655596, %v1835_v2  ;;  %v1843_v4 = vadd.f32 0.008332121, %v1842_v30  ;;  %v1339_v46 = vadd.s32 %v1338_v63, %v1334_v34  ;;  %v1889_v7 = vor.u32 %v1888_v16, %v1887_v18 }
 0x24e   : > { %v1891_v42 = vshrl.u32 %v2626_v60, %v4048_v17  ;;  %v4076_v49 = vor.u32 %v1885_v19, %v1884_v13  ;;  %v1851_v56 = vand.u32 3, %v1850_v37  ;;  %v1869_v55 = vor.u32 8388608, %v1868_v23 }
 0x24f   : > { %v1837_v21 = vmul.f32 %v1836_v38, %v1834_v33  ;;  %v1844_v9 = vmul.f32 %v1843_v4, %v1834_v33  ;;  %v1340_v25 = vadd.s32 536870912, %v1339_v46  ;;  %v4078_v1 = vor.u32 %v1879_v57, %v1878_v27 }
 0x250   : > { %v1892_v31 = vor.u32 %v1891_v42, %v1890_v11  ;;  %vm1896_vm14 = vcmp.lt.s32.totalorder %v4055_v36, 4  ;;  %vm1893_vm15 = vcmp.lt.s32.totalorder %v4055_v36, 1  ;;  %vm1895_vm1 = vcmp.lt.s32.totalorder %v4055_v36, 3 }
 0x251   : > { %v1838_v40 = vadd.f32 -0.4999988, %v1837_v21  ;;  %v1845_v45 = vadd.f32 -0.16666654, %v1844_v9  ;;  %v4080_v14 = vshrl.u32 %v1340_v25, 30  ;;  %v1905_v52 = vsel %vm1893_vm15, %v4071_v54, %v4076_v49 }
 0x252   : > { %v1902_v51 = vsel %vm1896_vm14, %v1889_v7, 920167782  ;;  %v1906_v60 = vsel %vm1896_vm14, %v1892_v31, 1326507024  ;;  %v1901_v48 = vsel %vm1893_vm15, %v4078_v1, %v4071_v54  ;;  %v4103_v50 = vshll.u32 %v1869_v55, 8 }
 0x253   : > { %v1839_v24 = vmul.f32 %v1838_v40, %v1834_v33  ;;  %v1846_v47 = vmul.f32 %v1845_v45, %v1834_v33  ;;  %v1342_v28 = vshll.u32 %v4080_v14, 30  ;;  %v1903_v53 = vsel %vm1895_vm1, %v4076_v49, %v1902_v51 }
 0x254   : > { %v1907_v8 = vsel %vm1895_vm1, %v1889_v7, %v1906_v60  ;;  %vm1894_vm0 = vcmp.lt.s32.totalorder %v4055_v36, 2  ;;  %vm1852_vm2 = vcmp.lt.s32.totalorder %v1851_v56, 2  ;;  %vm1853_vm3 = vcmp.eq.s32.totalorder %v1851_v56, 0 }
 0x255   : > { %v1840_v59 = vadd.f32 1.0, %v1839_v24  ;;  %v1847_v32 = vadd.f32 1.0, %v1846_v47  ;;  %v1343_v20 = vsub.s32 %v1339_v46, %v1342_v28  ;;  %v1908_v39 = vsel %vm1894_vm0, %v1905_v52, %v1907_v8 }
 0x256   : > { %v1904_v23 = vsel %vm1894_vm0, %v1901_v48, %v1903_v53  ;;  %vm1856_vm4 = vcmp.eq.s32.totalorder %v1851_v56, 2  ;;  %v1910_v37 = vand.u32 65535, %v4103_v50  ;;  %v1913_v12 = vshrl.u32 %v1908_v39, 16 }
 0x257   : > { %v1848_v15 = vmul.f32 %v1847_v32, %v1832_v58  ;;  %v1857_v29 = vxor.u32 2147483648, %v1840_v59  ;;  %vm1344_vm5 = vcmp.lt.s32.totalorder %v1343_v20, 0  ;;  %v1345_v33 = vsub.s32 0, %v1343_v20 }
 0x258   : > { %v1912_v58 = vand.u32 65535, %v1908_v39  ;;  %v1911_v22 = vshrl.u32 %v4103_v50, 16  ;;  %vm1849_vm6 = vweird.f32 %v3703_v3  ;;  %v1935_v38 = vshrl.u32 %v1904_v23, 16 }
 0x259   : > { %v1854_v35 = vxor.u32 2147483648, %v1848_v15  ;;  %v1858_v30 = vsel %vm1856_vm4, %v1857_v29, %v1848_v15  ;;  %v1346_v34 = vsel %vm1344_vm5, %v1345_v33, %v1343_v20  ;;  %v1915_v44 = vmul.u32 %v1913_v12, %v1910_v37 }
 0x25a   : > { %v1347_v5 = vclz %v1346_v34  ;;  %v1916_v19 = vmul.u32 %v1912_v58, %v1911_v22  ;;  %v1934_v63 = vand.u32 65535, %v1904_v23  ;;  %v1335_v18 = vadd.s32 %v4052_v10, %v4050_v6 }
 0x25b   : > { %v1855_v2 = vsel %vm1853_vm3, %v1840_v59, %v1854_v35  ;;  %v1914_v16 = vmul.u32 %v1912_v58, %v1910_v37  ;;  %v1917_v21 = vmul.u32 %v1913_v12, %v1911_v22  ;;  %v1918_v9 = vshll.u32 %v1915_v44, 16 }
 0x25c   : > { %v1859_v27 = vsel %vm1852_vm2, %v1855_v2, %v1858_v30  ;;  %v2461_v57 = vadd.s32 4294967294, %v1347_v5  ;;  %v1919_v46 = vshrl.u32 %v1915_v44, 16  ;;  %v1920_v13 = vshll.u32 %v1916_v19, 16 }
 0x25d   : > { %v1860_v4 = vsel %vm1849_vm6, nan, %v1859_v27  ;;  %v1937_v3 = vmul.u32 %v1935_v38, %v1910_v37  ;;  %vm1922_vm9 = vc.u32 %v1914_v16, %v1918_v9  ;;  %v1924_v11 = vadd.s32 %v1918_v9, %v1914_v16 }
 0x25e   : > { %2335 = vst [vmem:[%s3035_s11 + $0x48] sm:$0xff] %v1860_v4  ;;  %vm2462_vm7 = vcmp.lt.s32.totalorder %v2461_v57, 0  ;;  %v1938_v42 = vmul.u32 %v1934_v63, %v1911_v22  ;;  %v1923_v25 = vsel %vm1922_vm9, 1, %v2627_v0  ;;  %v1936_v56 = vmul.u32 %v1934_v63, %v1910_v37 }
 0x25f   : > { %v1350_v7 = vsel %vm2462_vm7, 0, %v2461_v57  ;;  %v1925_v55 = vadd.s32 %v1923_v25, %v1917_v21  ;;  %vm1926_vm8 = vc.u32 %v1924_v11, %v1920_v13  ;;  %v1939_v31 = vmul.u32 %v1935_v38, %v1911_v22 }
 0x260   : > { %v1351_v40 = vsub.s32 32, %v1350_v7  ;;  %v1355_v45 = vsub.s32 4294967266, %v1350_v7  ;;  %v1940_v6 = vshll.u32 %v1937_v3, 16  ;;  %v1352_v10 = vshll.u32 %v1343_v20, %v1350_v7 }
 0x261   : > { %v1927_v51 = vsel %vm1926_vm8, 1, %v2627_v0  ;;  %v1942_v59 = vshll.u32 %v1938_v42, 16  ;;  %v1877_v48 = vshrl.u32 %v2621_v43, %v4048_v17  ;;  %v1898_v8 = vsel %vm1896_vm14, %v4076_v49, 2102212464 }
 0x262   : > { %v1353_v24 = vshrl.u32 %v1335_v18, %v1351_v40  ;;  %v1356_v47 = vadd.s32 127, %v1355_v45  ;;  %v1929_v60 = vadd.s32 %v1927_v51, %v1925_v55  ;;  %vm1944_vm11 = vc.u32 %v1936_v56, %v1940_v6 }
 0x263   : > { %v1946_v32 = vadd.s32 %v1940_v6, %v1936_v56  ;;  %v1945_v53 = vsel %vm1944_vm11, 1, %v2627_v0  ;;  %v1921_v39 = vshrl.u32 %v1916_v19, 16  ;;  %v1897_v33 = vsel %vm1893_vm15, %v1877_v48, %v4078_v1 }
 0x264   : > { %v1354_v28 = vor.u32 %v1353_v24, %v1352_v10  ;;  %v1357_v52 = vshll.u32 %v1356_v47, 23  ;;  %v1930_v15 = vadd.s32 %v1929_v60, %v1919_v46  ;;  %v1947_v29 = vadd.s32 %v1945_v53, %v1939_v31 }
 0x265   : > { %vm1948_vm10 = vc.u32 %v1946_v32, %v1942_v59  ;;  %v1941_v23 = vshrl.u32 %v1937_v3, 16  ;;  %v1899_v58 = vsel %vm1895_vm1, %v4071_v54, %v1898_v8  ;;  %v1943_v12 = vshrl.u32 %v1938_v42, 16 }
 0x266   : > { %v1358_v20 = vor.u32 4788187, %v1357_v52  ;;  %v1949_v35 = vsel %vm1948_vm10, 1, %v2627_v0  ;;  %v1361_v17 = vcvt.s32.f32 %v1354_v28  ;;  %v1931_v49 = vadd.s32 %v1930_v15, %v1921_v39 }
 0x267   : > { %v1951_v37 = vadd.s32 %v1949_v35, %v1947_v29  ;;  %v1950_v34 = vadd.s32 %v1946_v32, %v1942_v59  ;;  %v1900_v0 = vsel %vm1894_vm0, %v1897_v33, %v1899_v58  ;;  %vm1243_vm13 = vcmp.lt.s32.totalorder %v3912_v62, 0 }
 0x268   : > { %v1359_v43 = vand.u32 2147483647, %v1358_v20  ;;  %vm4137_vm14 = vcmp.le.f32.partialorder %v1241_v41, 0.7853982  ;;  %v1954_v38 = vmul.u32 %v4103_v50, %v1900_v0  ;;  %v1365_v4 = vsub.s32 4, %v4080_v14 }
 0x269   : > { %v1952_v2 = vadd.s32 %v1951_v37, %v1941_v23  ;;  %vm1956_vm12 = vc.u32 %v1931_v49, %v1950_v34  ;;  %vm1384_vm1 = vweird.f32 %v3912_v62  ;;  %v1955_v53 = vadd.s32 %v1950_v34, %v1931_v49 }
 0x26a   : > { %v1362_v30 = vmul.f32 %v1361_v17, %v1359_v43  ;;  %v1366_v41 = vsel %vm1243_vm13, %v1365_v4, %v4080_v14  ;;  %vm1863_vm4 = vcmp.lt.s32.totalorder %v3946_v26, 0  ;;  %vm1862_vm6 = vcmp.le.f32.partialorder %v1861_v61, 0.7853982 }
 0x26b   : > { %v1953_v22 = vadd.s32 %v1952_v2, %v1943_v12  ;;  %v1368_v50 = vsel %vm4137_vm14, 0, %v1366_v41  ;;  %vm2004_vm11 = vweird.f32 %v3946_v26 }
 0x26c   : > { %v1363_v27 = vxor.u32 2147483648, %v1362_v30  ;;  %v1385_v45 = vadd.s32 3, %v1368_v50 }
 0x26d   : > { %v1957_v1 = vadd.s32 1, %v1953_v22 }
 0x26e   : > { %v1364_v54 = vsel %vm1243_vm13, %v1363_v27, %v1362_v30  ;;  %v1386_v10 = vand.u32 3, %v1385_v45 }
 0x26f   : > { %v1367_v36 = vsel %vm4137_vm14, %v3912_v62, %v1364_v54  ;;  %v1958_v44 = vsel %vm1956_vm12, %v1957_v1, %v1953_v22 }
 0x270   : > { %v1369_v19 = vmul.f32 %v1367_v36, %v1367_v36  ;;  %v1959_v63 = vadd.s32 %v1958_v44, %v1954_v38  ;;  %vm1388_vm0 = vcmp.eq.s32.totalorder %v1386_v10, 0  ;;  %vm1391_vm2 = vcmp.eq.s32.totalorder %v1386_v10, 2 }
 0x271   : > { %vm1387_vm5 = vcmp.lt.s32.totalorder %v1386_v10, 2 }
 0x272   : > { %v1370_v57 = vmul.f32 -0.001358992, %v1369_v19  ;;  %v1377_v18 = vmul.f32 -0.00019511016, %v1369_v19  ;;  %v1960_v16 = vadd.s32 536870912, %v1959_v63 }
 0x274   : > { %v1371_v21 = vadd.f32 0.041655596, %v1370_v57  ;;  %v1378_v9 = vadd.f32 0.008332121, %v1377_v18  ;;  %v1961_v46 = vshrl.u32 %v1960_v16, 30 }
 0x276   : > { %v1372_v13 = vmul.f32 %v1371_v21, %v1369_v19  ;;  %v1379_v3 = vmul.f32 %v1378_v9, %v1369_v19  ;;  %v1962_v7 = vshll.u32 %v1961_v46, 30  ;;  %v1985_v12 = vsub.s32 4, %v1961_v46 }
 0x278   : > { %v1373_v11 = vadd.f32 -0.4999988, %v1372_v13  ;;  %v1380_v42 = vadd.f32 -0.16666654, %v1379_v3  ;;  %v1963_v40 = vsub.s32 %v1959_v63, %v1962_v7  ;;  %v1986_v22 = vsel %vm1863_vm4, %v1985_v12, %v1961_v46 }
 0x279   : > { %v1988_v5 = vsel %vm1862_vm6, 0, %v1986_v22 }
 0x27a   : > { %v1374_v25 = vmul.f32 %v1373_v11, %v1369_v19  ;;  %v1381_v56 = vmul.f32 %v1380_v42, %v1369_v19  ;;  %vm1964_vm15 = vcmp.lt.s32.totalorder %v1963_v40, 0  ;;  %v1965_v55 = vsub.s32 0, %v1963_v40 }
 0x27b   : > { %v2005_v44 = vadd.s32 3, %v1988_v5 }
 0x27c   : > { %v1375_v31 = vadd.f32 1.0, %v1374_v25  ;;  %v1382_v6 = vadd.f32 1.0, %v1381_v56  ;;  %v1966_v14 = vsel %vm1964_vm15, %v1965_v55, %v1963_v40 }
 0x27d   : > { %v1967_v24 = vclz %v1966_v14  ;;  %v2006_v18 = vand.u32 3, %v2005_v44 }
 0x27e   : > { %v1383_v47 = vmul.f32 %v1382_v6, %v1367_v36  ;;  %v1392_v51 = vxor.u32 2147483648, %v1375_v31 }
 0x27f   : > { %v2473_v60 = vadd.s32 4294967294, %v1967_v24  ;;  %vm2008_vm7 = vcmp.eq.s32.totalorder %v2006_v18, 0  ;;  %vm2011_vm9 = vcmp.eq.s32.totalorder %v2006_v18, 2  ;;  %vm2007_vm8 = vcmp.lt.s32.totalorder %v2006_v18, 2 }
 0x280   : > { %v1389_v59 = vxor.u32 2147483648, %v1383_v47  ;;  %v1393_v28 = vsel %vm1391_vm2, %v1392_v51, %v1383_v47 }
 0x281   : > { %vm2474_vm3 = vcmp.lt.s32.totalorder %v2473_v60, 0 }
 0x282   : > { %v1390_v32 = vsel %vm1388_vm0, %v1375_v31, %v1389_v59  ;;  %v1970_v52 = vsel %vm2474_vm3, 0, %v2473_v60 }
 0x283   : > { %v1394_v48 = vsel %vm1387_vm5, %v1390_v32, %v1393_v28  ;;  %v1971_v8 = vsub.s32 32, %v1970_v52  ;;  %v1975_v15 = vsub.s32 4294967266, %v1970_v52  ;;  %v1972_v20 = vshll.u32 %v1963_v40, %v1970_v52 }
 0x284   : > { %v1395_v29 = vsel %vm1384_vm1, nan, %v1394_v48 }
 0x285   : > { %2332 = vst [vmem:[%s3035_s11 + $0x30] sm:$0xff] %v1395_v29  ;;  %v1973_v39 = vshrl.u32 %v1955_v53, %v1971_v8  ;;  %v1976_v35 = vadd.s32 127, %v1975_v15 }
 0x287   : > { %v1974_v33 = vor.u32 %v1973_v39, %v1972_v20  ;;  %v1977_v23 = vshll.u32 %v1976_v35, 23 }
 0x289   : > { %v1978_v37 = vor.u32 4788187, %v1977_v23  ;;  %v1981_v43 = vcvt.s32.f32 %v1974_v33 }
 0x28b   : > { %v1979_v62 = vand.u32 2147483647, %v1978_v37 }
 0x28d   : > { %v1982_v17 = vmul.f32 %v1981_v43, %v1979_v62 }
 0x28f   : > { %v1983_v58 = vxor.u32 2147483648, %v1982_v17 }
 0x291   : > { %v1984_v49 = vsel %vm1863_vm4, %v1983_v58, %v1982_v17 }
 0x292   : > { %v1987_v2 = vsel %vm1862_vm6, %v3946_v26, %v1984_v49 }
 0x293   : > { %v1989_v30 = vmul.f32 %v1987_v2, %v1987_v2 }
 0x295   : > { %v1990_v34 = vmul.f32 -0.001358992, %v1989_v30  ;;  %v1997_v0 = vmul.f32 -0.00019511016, %v1989_v30 }
 0x297   : > { %v1991_v27 = vadd.f32 0.041655596, %v1990_v34  ;;  %v1998_v1 = vadd.f32 0.008332121, %v1997_v0 }
 0x299   : > { %v1992_v54 = vmul.f32 %v1991_v27, %v1989_v30  ;;  %v1999_v38 = vmul.f32 %v1998_v1, %v1989_v30 }
 0x29b   : > { %v1993_v4 = vadd.f32 -0.4999988, %v1992_v54  ;;  %v2000_v36 = vadd.f32 -0.16666654, %v1999_v38 }
 0x29d   : > { %v1994_v19 = vmul.f32 %v1993_v4, %v1989_v30  ;;  %v2001_v63 = vmul.f32 %v2000_v36, %v1989_v30 }
 0x29f   : > { %v1995_v61 = vadd.f32 1.0, %v1994_v19  ;;  %v2002_v57 = vadd.f32 1.0, %v2001_v63 }
 0x2a1   : > { %v2003_v16 = vmul.f32 %v2002_v57, %v1987_v2  ;;  %v2012_v41 = vxor.u32 2147483648, %v1995_v61 }
 0x2a3   : > { %v2009_v21 = vxor.u32 2147483648, %v2003_v16  ;;  %v2013_v46 = vsel %vm2011_vm9, %v2012_v41, %v2003_v16 }
 0x2a4   : > { %2346 = sbr.rel (!%p2689_p5) target bundleno = 712 (0x2c8), region = 36 }
 0x2a5   : > { %v2010_v9 = vsel %vm2008_vm7, %v1995_v61, %v2009_v21 }
 0x2a6   : > { %v2014_v50 = vsel %vm2007_vm8, %v2010_v9, %v2013_v46 }
 0x2a7   : > { %v2015_v13 = vsel %vm2004_vm11, nan, %v2014_v50 }
 0x2a8   : > { %2336 = vst [vmem:[%s3035_s11 + $0x50] sm:$0xff] %v2015_v13 }
 0x2a9   : > { %s4250_s26 = smov (!%p2349_p11, %s2348_s26), 13 }
 0x2aa   : > { %s2481_s27 = sshll.u32 %s4250_s26, 3 }
 0x2ab   : > { %s2352_s29 = ssub.s32 104, %s2481_s27 }
 0x2ac   : > { %s2353_s30 = sshll.u32 %s2352_s29, 4 }
 0x2ad   : > { %2354 = vsyncadd %s4159_s25, %s2353_s30  ;;  %p4168_p12 = scmp.ne.s32.totalorder %s2481_s27, 0  ;;  %s2488_s22 = smul.u32 104, %s2672_s16 }
 0x2ae   : > { %s2359_s5 = sshll.u32 %s3035_s11, 4  ;;  %s2485_s28 = sshll.u32 %s4250_s26, 7  ;;  %s4178_s5 = int_to_ptr.vmem [resolvable:$true] %s2359_s5 }
 0x2af   : > { %s2357_s8 = scalar_lea.hbm %s4223_s3, %s2488_s22  ;;  %s2546_s10 = sshra.s32 %s4178_s5, 4  ;;  %s2547_s10 = int_to_ptr.vmem [resolvable:$true] %s2546_s10 }
 0x2b0   : > { %s2361_s9 = sshll.u32 %s2357_s8, 4  ;;  %s2548_s17 = sshrl.u32 %s2485_s28, 4  ;;  %s4180_s9 = int_to_ptr.hbm [resolvable:$true] %s2361_s9 }
 0x2b1   : > { %s2553_s19 = scalar_lea.vmem %s2547_s10, %s2548_s17  ;;  %s2628_s16 = smov [#allocation2]  }
 0x2b2   : > { %p2554_p13 = scmp.ne.s32.totalorder %s2547_s10, %s2553_s19  ;;  %s2557_s11 = scalar_lea.vmem %s2628_s16, 208 }
 0x2b3   : > { %p2559_p2 = scmp.lt.s32.totalorder %s2557_s11, %s2553_s19 }
 0x2b4   : > { %p2555_p0 = pnand %p2554_p13, %p4168_p12 }
 0x2b6   : > { %p2556_p1 = pneg %p2555_p0 }
 0x2b8   : > { %p2561_p3 = pnand %p2559_p2, %p2556_p1 }
 0x2ba   : > { %2564 = shalt.err (!%p2561_p3)
}
 0x2bb   : > { %s2565_s20 = sshra.s32 %s4180_s9, 4  ;;  %s2576_s30 = scalar_lea.hbm %s4223_s3, 200  ;;  %s2566_s20 = int_to_ptr.hbm [resolvable:$true] %s2565_s20 }
 0x2bc   : > { %s2572_s24 = scalar_lea.hbm %s2566_s20, %s2548_s17  ;;  %p2577_p8 = scmp.lt.s32.totalorder %s2566_s20, %s4223_s3 }
 0x2bd   : > { %p2573_p4 = scmp.ne.s32.totalorder %s2566_s20, %s2572_s24  ;;  %p2578_p9 = scmp.lt.s32.totalorder %s2576_s30, %s2572_s24 }
 0x2bf   : > { %p2574_p5 = pnand %p2573_p4, %p4168_p12  ;;  %p2579_p10 = por %p2578_p9, %p2577_p8 }
 0x2c1   : > { %p2575_p7 = pneg %p2574_p5 }
 0x2c3   : > { %p2580_p11 = pnand %p2579_p10, %p2575_p7 }
 0x2c5   : > { %2583 = shalt.err (!%p2580_p11)
}
 0x2c6   : > { %s2629_s7 = smov 128   ;;  %s2630_s8 = smov 8  }
 0x2c7   : > { %2367 = dma.vmem_to_hbm [thread:$0]  (%p4168_p12), %s4178_s5, %s2485_s28, %s4180_s9, %s4159_s25, %s2629_s7, %s2629_s7, %s2630_s8  }
 0x2c8 PF: > { %p2501_p13 = scmp.ge.s32.totalorder %s2619_s15, 2  ;;  %s2376_s10 = sand.u32 1, %s2607_s12  }
 0x2c9   : > { %s2377_s17 = scalar_lea.sflag [#allocation3], %s2376_s10 }
 0x2ca   : > { %p2498_p0 = pnand %p2501_p13, %p2693_p6 }
 0x2cc   : > { %p2499_p1 = pneg %p2498_p0 }
 0x2ce   : > { %2602 = dma.done.wait (%p2499_p1), %s2377_s17, 1664  }
 0x2cf   : > { %2604 = vsyncadd (%p2499_p1), %s2377_s17, 4294965632  ;;  %p13_p2 = scmp.ge.s32.totalorder %s2676_s18, 4   ;;  %s4245_s12 = smov %s2611_s13 }
 0x2d0   : > { %s4246_s13 = smov %s2615_s14  ;;  %s4247_s14 = smov %s2687_s21 }
 0x2d1   : > { %s4248_s15 = smov %s2676_s18  ;;  %15 = sbr.rel (!%p13_p2) target bundleno = 3 (0x3), region = 67 }
 0x2d6   :  { %2383 = vsyncpa [#allocation3], 1 }
 0x2d7   :  { %2385 = vsyncpa [#allocation3 + $0x1], 1 }

</bundles_post_ra>
